<compile_context>
chip_gen: v5e
topology: v5e:2x2
jax: 0.10.0
libtpu: 0.0.40
codegen_flags: <defaults>
</compile_context>

<pallas_src>
import functools

import jax
import jax.numpy as jnp
from jax.experimental import pallas as pl
from jax.experimental.pallas import tpu as pltpu


def _round_up(x, m):
    return ((x + m - 1) // m) * m


# ---------------------------------------------------------------------------
# In-kernel helpers (traced into the Pallas body)
# ---------------------------------------------------------------------------
def _gelu(x):
    # Exact GELU (matches torch.nn.GELU() default, erf-based).
    return 0.5 * x * (1.0 + jax.lax.erf(x * (1.0 / jnp.sqrt(2.0)).astype(x.dtype)))


def _layernorm_no_affine(x, eps=1e-5):
    # torch.nn.LayerNorm(dim, elementwise_affine=False): biased variance, eps=1e-5.
    mean = jnp.mean(x, axis=-1, keepdims=True)
    var = jnp.mean(jnp.square(x - mean), axis=-1, keepdims=True)
    return (x - mean) * jax.lax.rsqrt(var + eps)


def _one_hot(idx_col, vocab, dtype):
    # idx_col: [TB, 1] int32 -> one-hot [TB, vocab] in `dtype` (exact 0/1 values).
    lanes = jax.lax.broadcasted_iota(jnp.int32, (idx_col.shape[0], vocab), 1)
    return jnp.where(lanes == idx_col, 1.0, 0.0).astype(dtype)


def _gather_rows(idx_col, table, compute_dtype):
    """table[idx] via one-hot @ table on the MXU; returns f32 [TB, D]."""
    dn = (((1,), (0,)), ((), ()))
    vocab = table.shape[0]
    if jnp.dtype(compute_dtype) == jnp.dtype(jnp.bfloat16):
        onehot = _one_hot(idx_col, vocab, jnp.bfloat16)
        return jax.lax.dot_general(onehot, table.astype(jnp.bfloat16), dn,
                                   preferred_element_type=jnp.float32)
    # f32 path: split the table into three bf16-exact components
    # (table == p0 + p1 + p2 exactly, each part bf16-representable) so the
    # row selection is bit-exact even if the MXU emulates f32 matmuls with
    # bf16 passes.  Collapse to a single dot if ~1e-5 relative gather error
    # is acceptable.
    onehot = _one_hot(idx_col, vocab, jnp.float32)
    out = None
    rem = table
    for _ in range(3):
        part = rem.astype(jnp.bfloat16).astype(jnp.float32)
        rem = rem - part
        sel = jax.lax.dot_general(onehot, part, dn,
                                  preferred_element_type=jnp.float32)
        out = sel if out is None else out + sel
    return out


# ---------------------------------------------------------------------------
# Fused kernel: 4 embedding gathers -> concat -> Linear(256->128) -> LN ->
#   GELU -> Linear(128->64) -> LN -> GELU -> Linear(64->128) -> GELU
# ---------------------------------------------------------------------------
def _user_model_kernel(ids_ref, genders_ref, ages_ref, occs_ref,
                       id_tbl_ref, gender_tbl_ref, age_tbl_ref, occ_tbl_ref,
                       w1_ref, b1_ref, w2_ref, b2_ref, w3_ref, b3_ref,
                       o_ref, *, compute_dtype):
    # Fused embedding lookups + concat (combine_op='cat') -> [TB, 4*feat_dim].
    combined = jnp.concatenate(
        [_gather_rows(ids_ref[...], id_tbl_ref[...], compute_dtype),
         _gather_rows(genders_ref[...], gender_tbl_ref[...], compute_dtype),
         _gather_rows(ages_ref[...], age_tbl_ref[...], compute_dtype),
         _gather_rows(occs_ref[...], occ_tbl_ref[...], compute_dtype)],
        axis=1)

    def dense(x, w_ref, b_ref):
        # Matmul in compute_dtype (bf16 hits the native MXU path), f32
        # accumulation; bias / LN / GELU stay in f32.  Biases are loaded once
        # per grid step (no inner loop -> no repeated broadcast).
        return jnp.dot(x.astype(compute_dtype),
                       w_ref[...].astype(compute_dtype),
                       preferred_element_type=jnp.float32) + b_ref[...]

    h = _gelu(_layernorm_no_affine(dense(combined, w1_ref, b1_ref)))
    h = _gelu(_layernorm_no_affine(dense(h, w2_ref, b2_ref)))
    o_ref[...] = _gelu(dense(h, w3_ref, b3_ref)).astype(o_ref.dtype)
    # TODO(synk): for very large id vocabularies the one-hot gather / VMEM-
    # resident table should be replaced by a scalar-prefetched DMA gather.


# ---------------------------------------------------------------------------
# Wrapper
# ---------------------------------------------------------------------------
def user_model_forward(params, user_ids, user_genders, user_ages, user_occs,
                       *, block_batch=512, compute_dtype=jnp.bfloat16):
    batch = user_ids.shape[0]
    out_dim = params["w3"].shape[1]

    # Batch tile: multiple of 8 (f32 sublane), capped by block_batch.
    tb = _round_up(min(block_batch, _round_up(batch, 8)), 8)
    padded = _round_up(batch, tb)
    grid = (padded // tb,)

    def pad_idx(v):
        v = v.astype(jnp.int32)
        return jnp.pad(v, (0, padded - batch)).reshape(padded, 1)

    def pad_table(t):
        rows = _round_up(t.shape[0], 8)   # sublane-align the vocab axis
        return jnp.pad(t, ((0, rows - t.shape[0]), (0, 0)))

    idx_inputs = [pad_idx(user_ids), pad_idx(user_genders),
                  pad_idx(user_ages), pad_idx(user_occs)]

    resident_arrays = [pad_table(params["id_emb"]),
                       pad_table(params["gender_emb"]),
                       pad_table(params["age_emb"]),
                       pad_table(params["occ_emb"]),
                       params["w1"], params["b1"],
                       params["w2"], params["b2"],
                       params["w3"], params["b3"]]

    idx_spec = pl.BlockSpec((tb, 1), lambda i: (i, 0))

    def resident(arr):
        # Whole array in VMEM; constant index_map -> fetched once, re-used
        # across all grid steps.
        return pl.BlockSpec(arr.shape, lambda i: (0, 0))

    out = pl.pallas_call(
        functools.partial(_user_model_kernel, compute_dtype=compute_dtype),
        out_shape=jax.ShapeDtypeStruct((padded, out_dim), jnp.float32),
        grid=grid,
        in_specs=[idx_spec] * 4 + [resident(a) for a in resident_arrays],
        out_specs=pl.BlockSpec((tb, out_dim), lambda i: (i, 0)),
        compiler_params=pltpu.CompilerParams(
            dimension_semantics=("parallel",)),
    )(*idx_inputs, *resident_arrays)

    return out[:batch]


# ---------------------------------------------------------------------------
# Deterministic parameter construction (synthetic init; no checkpoint load)
# ---------------------------------------------------------------------------
def make_params(key, num_user_ids, num_user_genders, num_user_ages,
                num_user_occupations, feat_embed_dim=64, output_embed_dim=128):
    ks = jax.random.split(key, 10)
    f32 = jnp.float32
    in_dim = 4 * feat_embed_dim  # combine_op='cat'

    def lin(kw, kb, fan_in, fan_out):
        bound = 1.0 / jnp.sqrt(fan_in)
        w = jax.random.uniform(kw, (fan_in, fan_out), f32, -bound, bound)
        b = jax.random.uniform(kb, (1, fan_out), f32, -bound, bound)
        return w, b

    w1, b1 = lin(ks[4], ks[5], in_dim, 128)
    w2, b2 = lin(ks[6], ks[7], 128, 64)
    w3, b3 = lin(ks[8], ks[9], 64, output_embed_dim)

    return {
        "id_emb": jax.random.normal(ks[0], (num_user_ids, feat_embed_dim), f32),
        "gender_emb": jax.random.normal(ks[1], (num_user_genders, feat_embed_dim), f32),
        "age_emb": jax.random.normal(ks[2], (num_user_ages, feat_embed_dim), f32),
        "occ_emb": jax.random.normal(ks[3], (num_user_occupations, feat_embed_dim), f32),
        "w1": w1, "b1": b1,
        "w2": w2, "b2": b2,
        "w3": w3, "b3": b3,
    }


if __name__ == "__main__":
    key = jax.random.PRNGKey(0)
    pkey, k_id, k_g, k_a, k_o = jax.random.split(key, 5)

    # Small, MovieLens-like vocab sizes; batch deliberately not a multiple of
    # the batch tile so the multi-step grid + padding path is exercised.
    num_user_ids, num_user_genders, num_user_ages, num_user_occupations = 100, 2, 7, 21
    batch = 37

    params = make_params(pkey, num_user_ids, num_user_genders, num_user_ages,
                         num_user_occupations)

    user_ids = jax.random.randint(k_id, (batch,), 0, num_user_ids, dtype=jnp.int32)
    user_genders = jax.random.randint(k_g, (batch,), 0, num_user_genders, dtype=jnp.int32)
    user_ages = jax.random.randint(k_a, (batch,), 0, num_user_ages, dtype=jnp.int32)
    user_occs = jax.random.randint(k_o, (batch,), 0, num_user_occupations, dtype=jnp.int32)

    # Pure-JAX reference of the PyTorch forward pass.
    def ref(params, ids, g, a, o):
        x = jnp.concatenate(
            [jnp.take(params["id_emb"], ids, axis=0),
             jnp.take(params["gender_emb"], g, axis=0),
             jnp.take(params["age_emb"], a, axis=0),
             jnp.take(params["occ_emb"], o, axis=0)], axis=1)

        def ln(v):
            m = jnp.mean(v, axis=-1, keepdims=True)
            var = jnp.mean((v - m) ** 2, axis=-1, keepdims=True)
            return (v - m) / jnp.sqrt(var + 1e-5)

        gelu = lambda v: jax.nn.gelu(v, approximate=False)
        h = gelu(ln(x @ params["w1"] + params["b1"]))
        h = gelu(ln(h @ params["w2"] + params["b2"]))
        return gelu(h @ params["w3"] + params["b3"])

    expected = ref(params, user_ids, user_genders, user_ages, user_occs)

    # f32 path: matches PyTorch numerics (bit-exact fused gather + f32 dots).
    fwd_f32 = jax.jit(functools.partial(
        user_model_forward, block_batch=16, compute_dtype=jnp.float32))
    out_f32 = jax.block_until_ready(
        fwd_f32(params, user_ids, user_genders, user_ages, user_occs))
    assert out_f32.shape == (batch, 128)
    assert jnp.allclose(out_f32, expected, atol=2e-3, rtol=2e-3)

    # bf16-matmul path: native MXU dtype on v5e/v6e/v7x (looser tolerance).
    fwd_bf16 = jax.jit(functools.partial(
        user_model_forward, block_batch=16, compute_dtype=jnp.bfloat16))
    out_bf16 = jax.block_until_ready(
        fwd_bf16(params, user_ids, user_genders, user_ages, user_occs))
    assert out_bf16.shape == (batch, 128)
    assert jnp.allclose(out_bf16, expected, atol=1e-1, rtol=1e-1)

    print("KERNEL_OK")
</pallas_src>

<mosaic_0001>
module attributes {stable_mosaic.version = 11 : i64} {
  func.func @_user_model_kernel(%arg0: i32, %arg1: memref<16x1xi32, #tpu.memory_space<vmem>>, %arg2: memref<16x1xi32, #tpu.memory_space<vmem>>, %arg3: memref<16x1xi32, #tpu.memory_space<vmem>>, %arg4: memref<16x1xi32, #tpu.memory_space<vmem>>, %arg5: memref<104x64xf32, #tpu.memory_space<vmem>>, %arg6: memref<8x64xf32, #tpu.memory_space<vmem>>, %arg7: memref<8x64xf32, #tpu.memory_space<vmem>>, %arg8: memref<24x64xf32, #tpu.memory_space<vmem>>, %arg9: memref<256x128xf32, #tpu.memory_space<vmem>>, %arg10: memref<1x128xf32, #tpu.memory_space<vmem>>, %arg11: memref<128x64xf32, #tpu.memory_space<vmem>>, %arg12: memref<1x64xf32, #tpu.memory_space<vmem>>, %arg13: memref<64x128xf32, #tpu.memory_space<vmem>>, %arg14: memref<1x128xf32, #tpu.memory_space<vmem>>, %arg15: memref<16x128xf32, #tpu.memory_space<vmem>>) attributes {dimension_semantics = [#tpu.dimension_semantics<parallel>], iteration_bounds = array<i64: 3>, scalar_prefetch = 0 : i64, scratch_operands = 0 : i64, tpu.core_type = #tpu.core_type<tc>, window_params = [{transform_indices = @transform_0, window_bounds = array<i64: 16, 1>}, {transform_indices = @transform_1, window_bounds = array<i64: 16, 1>}, {transform_indices = @transform_2, window_bounds = array<i64: 16, 1>}, {transform_indices = @transform_3, window_bounds = array<i64: 16, 1>}, {pipeline_mode = #tpu.pipeline_mode<synchronous>, transform_indices = @transform_4, window_bounds = array<i64: 104, 64>}, {pipeline_mode = #tpu.pipeline_mode<synchronous>, transform_indices = @transform_5, window_bounds = array<i64: 8, 64>}, {pipeline_mode = #tpu.pipeline_mode<synchronous>, transform_indices = @transform_6, window_bounds = array<i64: 8, 64>}, {pipeline_mode = #tpu.pipeline_mode<synchronous>, transform_indices = @transform_7, window_bounds = array<i64: 24, 64>}, {pipeline_mode = #tpu.pipeline_mode<synchronous>, transform_indices = @transform_8, window_bounds = array<i64: 256, 128>}, {pipeline_mode = #tpu.pipeline_mode<synchronous>, transform_indices = @transform_9, window_bounds = array<i64: 1, 128>}, {pipeline_mode = #tpu.pipeline_mode<synchronous>, transform_indices = @transform_10, window_bounds = array<i64: 128, 64>}, {pipeline_mode = #tpu.pipeline_mode<synchronous>, transform_indices = @transform_11, window_bounds = array<i64: 1, 64>}, {pipeline_mode = #tpu.pipeline_mode<synchronous>, transform_indices = @transform_12, window_bounds = array<i64: 64, 128>}, {pipeline_mode = #tpu.pipeline_mode<synchronous>, transform_indices = @transform_13, window_bounds = array<i64: 1, 128>}, {transform_indices = @transform_14, window_bounds = array<i64: 16, 128>}]} {
    %c0 = arith.constant 0 : index
    %c0_0 = arith.constant 0 : index
    %0 = vector.load %arg1[%c0, %c0_0] : memref<16x1xi32, #tpu.memory_space<vmem>>, vector<16x1xi32>
    %c0_1 = arith.constant 0 : index
    %c0_2 = arith.constant 0 : index
    %1 = vector.load %arg5[%c0_1, %c0_2] : memref<104x64xf32, #tpu.memory_space<vmem>>, vector<104x64xf32>
    %2 = tpu.iota {dimensions = array<i32: 1>} : vector<16x104xi32>
    %3 = vector.broadcast %0 : vector<16x1xi32> to vector<16x104xi32>
    %4 = arith.cmpi eq, %2, %3 : vector<16x104xi32>
    %cst = arith.constant 1.000000e+00 : f32
    %cst_3 = arith.constant 0.000000e+00 : f32
    %5 = vector.broadcast %cst : f32 to vector<16x104xf32>
    %6 = vector.broadcast %cst_3 : f32 to vector<16x104xf32>
    %7 = arith.select %4, %5, %6 : vector<16x104xi1>, vector<16x104xf32>
    %8 = arith.truncf %1 : vector<104x64xf32> to vector<104x64xbf16>
    %9 = arith.extf %8 : vector<104x64xbf16> to vector<104x64xf32>
    %10 = arith.subf %1, %9 : vector<104x64xf32>
    %cst_4 = arith.constant dense<0.000000e+00> : vector<16x64xf32>
    %11 = tpu.matmul %7, %9, %cst_4 {dimension_numbers = #tpu.dot_dimension_numbers<[1], [0], [0], [1], [0, 0, 1, 1], [], []>} : vector<16x104xf32>, vector<104x64xf32>, vector<16x64xf32> -> vector<16x64xf32>
    %12 = arith.truncf %10 : vector<104x64xf32> to vector<104x64xbf16>
    %13 = arith.extf %12 : vector<104x64xbf16> to vector<104x64xf32>
    %14 = arith.subf %10, %13 : vector<104x64xf32>
    %cst_5 = arith.constant dense<0.000000e+00> : vector<16x64xf32>
    %15 = tpu.matmul %7, %13, %cst_5 {dimension_numbers = #tpu.dot_dimension_numbers<[1], [0], [0], [1], [0, 0, 1, 1], [], []>} : vector<16x104xf32>, vector<104x64xf32>, vector<16x64xf32> -> vector<16x64xf32>
    %16 = arith.addf %11, %15 : vector<16x64xf32>
    %17 = arith.truncf %14 : vector<104x64xf32> to vector<104x64xbf16>
    %18 = arith.extf %17 : vector<104x64xbf16> to vector<104x64xf32>
    %cst_6 = arith.constant dense<0.000000e+00> : vector<16x64xf32>
    %19 = tpu.matmul %7, %18, %cst_6 {dimension_numbers = #tpu.dot_dimension_numbers<[1], [0], [0], [1], [0, 0, 1, 1], [], []>} : vector<16x104xf32>, vector<104x64xf32>, vector<16x64xf32> -> vector<16x64xf32>
    %20 = arith.addf %16, %19 : vector<16x64xf32>
    %c0_7 = arith.constant 0 : index
    %c0_8 = arith.constant 0 : index
    %21 = vector.load %arg2[%c0_7, %c0_8] : memref<16x1xi32, #tpu.memory_space<vmem>>, vector<16x1xi32>
    %c0_9 = arith.constant 0 : index
    %c0_10 = arith.constant 0 : index
    %22 = vector.load %arg6[%c0_9, %c0_10] : memref<8x64xf32, #tpu.memory_space<vmem>>, vector<8x64xf32>
    %23 = tpu.iota {dimensions = array<i32: 1>} : vector<16x8xi32>
    %24 = vector.broadcast %21 : vector<16x1xi32> to vector<16x8xi32>
    %25 = arith.cmpi eq, %23, %24 : vector<16x8xi32>
    %cst_11 = arith.constant 1.000000e+00 : f32
    %cst_12 = arith.constant 0.000000e+00 : f32
    %26 = vector.broadcast %cst_11 : f32 to vector<16x8xf32>
    %27 = vector.broadcast %cst_12 : f32 to vector<16x8xf32>
    %28 = arith.select %25, %26, %27 : vector<16x8xi1>, vector<16x8xf32>
    %29 = arith.truncf %22 : vector<8x64xf32> to vector<8x64xbf16>
    %30 = arith.extf %29 : vector<8x64xbf16> to vector<8x64xf32>
    %31 = arith.subf %22, %30 : vector<8x64xf32>
    %cst_13 = arith.constant dense<0.000000e+00> : vector<16x64xf32>
    %32 = tpu.matmul %28, %30, %cst_13 {dimension_numbers = #tpu.dot_dimension_numbers<[1], [0], [0], [1], [0, 0, 1, 1], [], []>} : vector<16x8xf32>, vector<8x64xf32>, vector<16x64xf32> -> vector<16x64xf32>
    %33 = arith.truncf %31 : vector<8x64xf32> to vector<8x64xbf16>
    %34 = arith.extf %33 : vector<8x64xbf16> to vector<8x64xf32>
    %35 = arith.subf %31, %34 : vector<8x64xf32>
    %cst_14 = arith.constant dense<0.000000e+00> : vector<16x64xf32>
    %36 = tpu.matmul %28, %34, %cst_14 {dimension_numbers = #tpu.dot_dimension_numbers<[1], [0], [0], [1], [0, 0, 1, 1], [], []>} : vector<16x8xf32>, vector<8x64xf32>, vector<16x64xf32> -> vector<16x64xf32>
    %37 = arith.addf %32, %36 : vector<16x64xf32>
    %38 = arith.truncf %35 : vector<8x64xf32> to vector<8x64xbf16>
    %39 = arith.extf %38 : vector<8x64xbf16> to vector<8x64xf32>
    %cst_15 = arith.constant dense<0.000000e+00> : vector<16x64xf32>
    %40 = tpu.matmul %28, %39, %cst_15 {dimension_numbers = #tpu.dot_dimension_numbers<[1], [0], [0], [1], [0, 0, 1, 1], [], []>} : vector<16x8xf32>, vector<8x64xf32>, vector<16x64xf32> -> vector<16x64xf32>
    %41 = arith.addf %37, %40 : vector<16x64xf32>
    %c0_16 = arith.constant 0 : index
    %c0_17 = arith.constant 0 : index
    %42 = vector.load %arg3[%c0_16, %c0_17] : memref<16x1xi32, #tpu.memory_space<vmem>>, vector<16x1xi32>
    %c0_18 = arith.constant 0 : index
    %c0_19 = arith.constant 0 : index
    %43 = vector.load %arg7[%c0_18, %c0_19] : memref<8x64xf32, #tpu.memory_space<vmem>>, vector<8x64xf32>
    %44 = tpu.iota {dimensions = array<i32: 1>} : vector<16x8xi32>
    %45 = vector.broadcast %42 : vector<16x1xi32> to vector<16x8xi32>
    %46 = arith.cmpi eq, %44, %45 : vector<16x8xi32>
    %cst_20 = arith.constant 1.000000e+00 : f32
    %cst_21 = arith.constant 0.000000e+00 : f32
    %47 = vector.broadcast %cst_20 : f32 to vector<16x8xf32>
    %48 = vector.broadcast %cst_21 : f32 to vector<16x8xf32>
    %49 = arith.select %46, %47, %48 : vector<16x8xi1>, vector<16x8xf32>
    %50 = arith.truncf %43 : vector<8x64xf32> to vector<8x64xbf16>
    %51 = arith.extf %50 : vector<8x64xbf16> to vector<8x64xf32>
    %52 = arith.subf %43, %51 : vector<8x64xf32>
    %cst_22 = arith.constant dense<0.000000e+00> : vector<16x64xf32>
    %53 = tpu.matmul %49, %51, %cst_22 {dimension_numbers = #tpu.dot_dimension_numbers<[1], [0], [0], [1], [0, 0, 1, 1], [], []>} : vector<16x8xf32>, vector<8x64xf32>, vector<16x64xf32> -> vector<16x64xf32>
    %54 = arith.truncf %52 : vector<8x64xf32> to vector<8x64xbf16>
    %55 = arith.extf %54 : vector<8x64xbf16> to vector<8x64xf32>
    %56 = arith.subf %52, %55 : vector<8x64xf32>
    %cst_23 = arith.constant dense<0.000000e+00> : vector<16x64xf32>
    %57 = tpu.matmul %49, %55, %cst_23 {dimension_numbers = #tpu.dot_dimension_numbers<[1], [0], [0], [1], [0, 0, 1, 1], [], []>} : vector<16x8xf32>, vector<8x64xf32>, vector<16x64xf32> -> vector<16x64xf32>
    %58 = arith.addf %53, %57 : vector<16x64xf32>
    %59 = arith.truncf %56 : vector<8x64xf32> to vector<8x64xbf16>
    %60 = arith.extf %59 : vector<8x64xbf16> to vector<8x64xf32>
    %cst_24 = arith.constant dense<0.000000e+00> : vector<16x64xf32>
    %61 = tpu.matmul %49, %60, %cst_24 {dimension_numbers = #tpu.dot_dimension_numbers<[1], [0], [0], [1], [0, 0, 1, 1], [], []>} : vector<16x8xf32>, vector<8x64xf32>, vector<16x64xf32> -> vector<16x64xf32>
    %62 = arith.addf %58, %61 : vector<16x64xf32>
    %c0_25 = arith.constant 0 : index
    %c0_26 = arith.constant 0 : index
    %63 = vector.load %arg4[%c0_25, %c0_26] : memref<16x1xi32, #tpu.memory_space<vmem>>, vector<16x1xi32>
    %c0_27 = arith.constant 0 : index
    %c0_28 = arith.constant 0 : index
    %64 = vector.load %arg8[%c0_27, %c0_28] : memref<24x64xf32, #tpu.memory_space<vmem>>, vector<24x64xf32>
    %65 = tpu.iota {dimensions = array<i32: 1>} : vector<16x24xi32>
    %66 = vector.broadcast %63 : vector<16x1xi32> to vector<16x24xi32>
    %67 = arith.cmpi eq, %65, %66 : vector<16x24xi32>
    %cst_29 = arith.constant 1.000000e+00 : f32
    %cst_30 = arith.constant 0.000000e+00 : f32
    %68 = vector.broadcast %cst_29 : f32 to vector<16x24xf32>
    %69 = vector.broadcast %cst_30 : f32 to vector<16x24xf32>
    %70 = arith.select %67, %68, %69 : vector<16x24xi1>, vector<16x24xf32>
    %71 = arith.truncf %64 : vector<24x64xf32> to vector<24x64xbf16>
    %72 = arith.extf %71 : vector<24x64xbf16> to vector<24x64xf32>
    %73 = arith.subf %64, %72 : vector<24x64xf32>
    %cst_31 = arith.constant dense<0.000000e+00> : vector<16x64xf32>
    %74 = tpu.matmul %70, %72, %cst_31 {dimension_numbers = #tpu.dot_dimension_numbers<[1], [0], [0], [1], [0, 0, 1, 1], [], []>} : vector<16x24xf32>, vector<24x64xf32>, vector<16x64xf32> -> vector<16x64xf32>
    %75 = arith.truncf %73 : vector<24x64xf32> to vector<24x64xbf16>
    %76 = arith.extf %75 : vector<24x64xbf16> to vector<24x64xf32>
    %77 = arith.subf %73, %76 : vector<24x64xf32>
    %cst_32 = arith.constant dense<0.000000e+00> : vector<16x64xf32>
    %78 = tpu.matmul %70, %76, %cst_32 {dimension_numbers = #tpu.dot_dimension_numbers<[1], [0], [0], [1], [0, 0, 1, 1], [], []>} : vector<16x24xf32>, vector<24x64xf32>, vector<16x64xf32> -> vector<16x64xf32>
    %79 = arith.addf %74, %78 : vector<16x64xf32>
    %80 = arith.truncf %77 : vector<24x64xf32> to vector<24x64xbf16>
    %81 = arith.extf %80 : vector<24x64xbf16> to vector<24x64xf32>
    %cst_33 = arith.constant dense<0.000000e+00> : vector<16x64xf32>
    %82 = tpu.matmul %70, %81, %cst_33 {dimension_numbers = #tpu.dot_dimension_numbers<[1], [0], [0], [1], [0, 0, 1, 1], [], []>} : vector<16x24xf32>, vector<24x64xf32>, vector<16x64xf32> -> vector<16x64xf32>
    %83 = arith.addf %79, %82 : vector<16x64xf32>
    %84 = tpu.concatenate %20, %41, %62, %83 in 1 : vector<16x64xf32>, vector<16x64xf32>, vector<16x64xf32>, vector<16x64xf32> -> vector<16x256xf32>
    %c0_34 = arith.constant 0 : index
    %c0_35 = arith.constant 0 : index
    %85 = vector.load %arg9[%c0_34, %c0_35] : memref<256x128xf32, #tpu.memory_space<vmem>>, vector<256x128xf32>
    %cst_36 = arith.constant dense<0.000000e+00> : vector<16x128xf32>
    %86 = tpu.matmul %84, %85, %cst_36 {dimension_numbers = #tpu.dot_dimension_numbers<[1], [0], [0], [1], [0, 0, 1, 1], [], []>} : vector<16x256xf32>, vector<256x128xf32>, vector<16x128xf32> -> vector<16x128xf32>
    %c0_37 = arith.constant 0 : index
    %c0_38 = arith.constant 0 : index
    %87 = vector.load %arg10[%c0_37, %c0_38] : memref<1x128xf32, #tpu.memory_space<vmem>>, vector<1x128xf32>
    %88 = vector.broadcast %87 : vector<1x128xf32> to vector<16x128xf32>
    %89 = arith.addf %86, %88 : vector<16x128xf32>
    %cst_39 = arith.constant dense<0.000000e+00> : vector<16xf32>
    %90 = vector.multi_reduction <add>, %89, %cst_39 [1] : vector<16x128xf32> to vector<16xf32>
    %91 = vector.shape_cast %90 : vector<16xf32> to vector<16x1xf32>
    %cst_40 = arith.constant 1.280000e+02 : f32
    %92 = vector.broadcast %cst_40 : f32 to vector<16x1xf32>
    %93 = arith.divf %91, %92 : vector<16x1xf32>
    %94 = vector.broadcast %93 : vector<16x1xf32> to vector<16x128xf32>
    %95 = arith.subf %89, %94 : vector<16x128xf32>
    %96 = arith.mulf %95, %95 : vector<16x128xf32>
    %cst_41 = arith.constant dense<0.000000e+00> : vector<16xf32>
    %97 = vector.multi_reduction <add>, %96, %cst_41 [1] : vector<16x128xf32> to vector<16xf32>
    %98 = vector.shape_cast %97 : vector<16xf32> to vector<16x1xf32>
    %cst_42 = arith.constant 1.280000e+02 : f32
    %99 = vector.broadcast %cst_42 : f32 to vector<16x1xf32>
    %100 = arith.divf %98, %99 : vector<16x1xf32>
    %101 = vector.broadcast %93 : vector<16x1xf32> to vector<16x128xf32>
    %102 = arith.subf %89, %101 : vector<16x128xf32>
    %cst_43 = arith.constant 9.99999974E-6 : f32
    %103 = vector.broadcast %cst_43 : f32 to vector<16x1xf32>
    %104 = arith.addf %100, %103 : vector<16x1xf32>
    %105 = math.rsqrt %104 : vector<16x1xf32>
    %106 = vector.broadcast %105 : vector<16x1xf32> to vector<16x128xf32>
    %107 = arith.mulf %102, %106 : vector<16x128xf32>
    %cst_44 = arith.constant 5.000000e-01 : f32
    %108 = vector.broadcast %cst_44 : f32 to vector<16x128xf32>
    %109 = arith.mulf %108, %107 : vector<16x128xf32>
    %cst_45 = arith.constant 2.000000e+00 : f32
    %110 = math.sqrt %cst_45 : f32
    %cst_46 = arith.constant 1.000000e+00 : f32
    %111 = arith.divf %cst_46, %110 : f32
    %112 = vector.broadcast %111 : f32 to vector<16x128xf32>
    %113 = arith.mulf %107, %112 : vector<16x128xf32>
    %114 = math.erf %113 : vector<16x128xf32>
    %cst_47 = arith.constant 1.000000e+00 : f32
    %115 = vector.broadcast %cst_47 : f32 to vector<16x128xf32>
    %116 = arith.addf %115, %114 : vector<16x128xf32>
    %117 = arith.mulf %109, %116 : vector<16x128xf32>
    %c0_48 = arith.constant 0 : index
    %c0_49 = arith.constant 0 : index
    %118 = vector.load %arg11[%c0_48, %c0_49] : memref<128x64xf32, #tpu.memory_space<vmem>>, vector<128x64xf32>
    %cst_50 = arith.constant dense<0.000000e+00> : vector<16x64xf32>
    %119 = tpu.matmul %117, %118, %cst_50 {dimension_numbers = #tpu.dot_dimension_numbers<[1], [0], [0], [1], [0, 0, 1, 1], [], []>} : vector<16x128xf32>, vector<128x64xf32>, vector<16x64xf32> -> vector<16x64xf32>
    %c0_51 = arith.constant 0 : index
    %c0_52 = arith.constant 0 : index
    %120 = vector.load %arg12[%c0_51, %c0_52] : memref<1x64xf32, #tpu.memory_space<vmem>>, vector<1x64xf32>
    %121 = vector.broadcast %120 : vector<1x64xf32> to vector<16x64xf32>
    %122 = arith.addf %119, %121 : vector<16x64xf32>
    %cst_53 = arith.constant dense<0.000000e+00> : vector<16xf32>
    %123 = vector.multi_reduction <add>, %122, %cst_53 [1] : vector<16x64xf32> to vector<16xf32>
    %124 = vector.shape_cast %123 : vector<16xf32> to vector<16x1xf32>
    %cst_54 = arith.constant 6.400000e+01 : f32
    %125 = vector.broadcast %cst_54 : f32 to vector<16x1xf32>
    %126 = arith.divf %124, %125 : vector<16x1xf32>
    %127 = vector.broadcast %126 : vector<16x1xf32> to vector<16x64xf32>
    %128 = arith.subf %122, %127 : vector<16x64xf32>
    %129 = arith.mulf %128, %128 : vector<16x64xf32>
    %cst_55 = arith.constant dense<0.000000e+00> : vector<16xf32>
    %130 = vector.multi_reduction <add>, %129, %cst_55 [1] : vector<16x64xf32> to vector<16xf32>
    %131 = vector.shape_cast %130 : vector<16xf32> to vector<16x1xf32>
    %cst_56 = arith.constant 6.400000e+01 : f32
    %132 = vector.broadcast %cst_56 : f32 to vector<16x1xf32>
    %133 = arith.divf %131, %132 : vector<16x1xf32>
    %134 = vector.broadcast %126 : vector<16x1xf32> to vector<16x64xf32>
    %135 = arith.subf %122, %134 : vector<16x64xf32>
    %cst_57 = arith.constant 9.99999974E-6 : f32
    %136 = vector.broadcast %cst_57 : f32 to vector<16x1xf32>
    %137 = arith.addf %133, %136 : vector<16x1xf32>
    %138 = math.rsqrt %137 : vector<16x1xf32>
    %139 = vector.broadcast %138 : vector<16x1xf32> to vector<16x64xf32>
    %140 = arith.mulf %135, %139 : vector<16x64xf32>
    %cst_58 = arith.constant 5.000000e-01 : f32
    %141 = vector.broadcast %cst_58 : f32 to vector<16x64xf32>
    %142 = arith.mulf %141, %140 : vector<16x64xf32>
    %cst_59 = arith.constant 2.000000e+00 : f32
    %143 = math.sqrt %cst_59 : f32
    %cst_60 = arith.constant 1.000000e+00 : f32
    %144 = arith.divf %cst_60, %143 : f32
    %145 = vector.broadcast %144 : f32 to vector<16x64xf32>
    %146 = arith.mulf %140, %145 : vector<16x64xf32>
    %147 = math.erf %146 : vector<16x64xf32>
    %cst_61 = arith.constant 1.000000e+00 : f32
    %148 = vector.broadcast %cst_61 : f32 to vector<16x64xf32>
    %149 = arith.addf %148, %147 : vector<16x64xf32>
    %150 = arith.mulf %142, %149 : vector<16x64xf32>
    %c0_62 = arith.constant 0 : index
    %c0_63 = arith.constant 0 : index
    %151 = vector.load %arg13[%c0_62, %c0_63] : memref<64x128xf32, #tpu.memory_space<vmem>>, vector<64x128xf32>
    %cst_64 = arith.constant dense<0.000000e+00> : vector<16x128xf32>
    %152 = tpu.matmul %150, %151, %cst_64 {dimension_numbers = #tpu.dot_dimension_numbers<[1], [0], [0], [1], [0, 0, 1, 1], [], []>} : vector<16x64xf32>, vector<64x128xf32>, vector<16x128xf32> -> vector<16x128xf32>
    %c0_65 = arith.constant 0 : index
    %c0_66 = arith.constant 0 : index
    %153 = vector.load %arg14[%c0_65, %c0_66] : memref<1x128xf32, #tpu.memory_space<vmem>>, vector<1x128xf32>
    %154 = vector.broadcast %153 : vector<1x128xf32> to vector<16x128xf32>
    %155 = arith.addf %152, %154 : vector<16x128xf32>
    %cst_67 = arith.constant 5.000000e-01 : f32
    %156 = vector.broadcast %cst_67 : f32 to vector<16x128xf32>
    %157 = arith.mulf %156, %155 : vector<16x128xf32>
    %cst_68 = arith.constant 2.000000e+00 : f32
    %158 = math.sqrt %cst_68 : f32
    %cst_69 = arith.constant 1.000000e+00 : f32
    %159 = arith.divf %cst_69, %158 : f32
    %160 = vector.broadcast %159 : f32 to vector<16x128xf32>
    %161 = arith.mulf %155, %160 : vector<16x128xf32>
    %162 = math.erf %161 : vector<16x128xf32>
    %cst_70 = arith.constant 1.000000e+00 : f32
    %163 = vector.broadcast %cst_70 : f32 to vector<16x128xf32>
    %164 = arith.addf %163, %162 : vector<16x128xf32>
    %165 = arith.mulf %157, %164 : vector<16x128xf32>
    %c0_71 = arith.constant 0 : index
    %c0_72 = arith.constant 0 : index
    %166 = vector.load %arg15[%c0_71, %c0_72] : memref<16x128xf32, #tpu.memory_space<vmem>>, vector<16x128xf32>
    tpu.vector_store %arg15[%c0_71, %c0_72], %165 {strides = array<i32>} : memref<16x128xf32, #tpu.memory_space<vmem>>, vector<16x128xf32>,
    return
  }
  func.func @transform_0(%arg0: i32) -> (i32, i32) {
    %c0_i32 = arith.constant 0 : i32
    %c0_i32_0 = arith.constant 0 : i32
    return %arg0, %c0_i32 : i32, i32
  }
  func.func @transform_1(%arg0: i32) -> (i32, i32) {
    %c0_i32 = arith.constant 0 : i32
    %c0_i32_0 = arith.constant 0 : i32
    return %arg0, %c0_i32 : i32, i32
  }
  func.func @transform_2(%arg0: i32) -> (i32, i32) {
    %c0_i32 = arith.constant 0 : i32
    %c0_i32_0 = arith.constant 0 : i32
    return %arg0, %c0_i32 : i32, i32
  }
  func.func @transform_3(%arg0: i32) -> (i32, i32) {
    %c0_i32 = arith.constant 0 : i32
    %c0_i32_0 = arith.constant 0 : i32
    return %arg0, %c0_i32 : i32, i32
  }
  func.func @transform_4(%arg0: i32) -> (i32, i32) {
    %c0_i32 = arith.constant 0 : i32
    %c0_i32_0 = arith.constant 0 : i32
    %c0_i32_1 = arith.constant 0 : i32
    return %c0_i32, %c0_i32_0 : i32, i32
  }
  func.func @transform_5(%arg0: i32) -> (i32, i32) {
    %c0_i32 = arith.constant 0 : i32
    %c0_i32_0 = arith.constant 0 : i32
    %c0_i32_1 = arith.constant 0 : i32
    return %c0_i32, %c0_i32_0 : i32, i32
  }
  func.func @transform_6(%arg0: i32) -> (i32, i32) {
    %c0_i32 = arith.constant 0 : i32
    %c0_i32_0 = arith.constant 0 : i32
    %c0_i32_1 = arith.constant 0 : i32
    return %c0_i32, %c0_i32_0 : i32, i32
  }
  func.func @transform_7(%arg0: i32) -> (i32, i32) {
    %c0_i32 = arith.constant 0 : i32
    %c0_i32_0 = arith.constant 0 : i32
    %c0_i32_1 = arith.constant 0 : i32
    return %c0_i32, %c0_i32_0 : i32, i32
  }
  func.func @transform_8(%arg0: i32) -> (i32, i32) {
    %c0_i32 = arith.constant 0 : i32
    %c0_i32_0 = arith.constant 0 : i32
    %c0_i32_1 = arith.constant 0 : i32
    return %c0_i32, %c0_i32_0 : i32, i32
  }
  func.func @transform_9(%arg0: i32) -> (i32, i32) {
    %c0_i32 = arith.constant 0 : i32
    %c0_i32_0 = arith.constant 0 : i32
    %c0_i32_1 = arith.constant 0 : i32
    return %c0_i32, %c0_i32_0 : i32, i32
  }
  func.func @transform_10(%arg0: i32) -> (i32, i32) {
    %c0_i32 = arith.constant 0 : i32
    %c0_i32_0 = arith.constant 0 : i32
    %c0_i32_1 = arith.constant 0 : i32
    return %c0_i32, %c0_i32_0 : i32, i32
  }
  func.func @transform_11(%arg0: i32) -> (i32, i32) {
    %c0_i32 = arith.constant 0 : i32
    %c0_i32_0 = arith.constant 0 : i32
    %c0_i32_1 = arith.constant 0 : i32
    return %c0_i32, %c0_i32_0 : i32, i32
  }
  func.func @transform_12(%arg0: i32) -> (i32, i32) {
    %c0_i32 = arith.constant 0 : i32
    %c0_i32_0 = arith.constant 0 : i32
    %c0_i32_1 = arith.constant 0 : i32
    return %c0_i32, %c0_i32_0 : i32, i32
  }
  func.func @transform_13(%arg0: i32) -> (i32, i32) {
    %c0_i32 = arith.constant 0 : i32
    %c0_i32_0 = arith.constant 0 : i32
    %c0_i32_1 = arith.constant 0 : i32
    return %c0_i32, %c0_i32_0 : i32, i32
  }
  func.func @transform_14(%arg0: i32) -> (i32, i32) {
    %c0_i32 = arith.constant 0 : i32
    %c0_i32_0 = arith.constant 0 : i32
    return %arg0, %c0_i32 : i32, i32
  }
}

</mosaic_0001>

<bundles_post_ra>
// kernel: user_model_forward.1
= control target key start
LH: loop header
LB: loop body
LE: loop exit
PB: predicated region body
PF: predicated region fallthrough
CT: control target
= control target key end

     0   :  { %s1887_s29 = smov 0   ;;  %s2311_s0 = inlined_call_operand.vmem [shape: s32[48,1], index: 0, kind: input, shape index: {}]   ;;  %s2312_s1 = inlined_call_operand.vmem [shape: s32[48,1], index: 1, kind: input, shape index: {}]   ;;  %s2313_s2 = inlined_call_operand.vmem [shape: s32[48,1], index: 2, kind: input, shape index: {}]   ;;  %s2314_s3 = inlined_call_operand.vmem [shape: s32[48,1], index: 3, kind: input, shape index: {}]   ;;  %s2315_s4 = inlined_call_operand.vmem [shape: f32[104,64], index: 4, kind: input, shape index: {}]   ;;  %s2316_s5 = inlined_call_operand.vmem [shape: f32[8,64], index: 5, kind: input, shape index: {}]   ;;  %s2317_s6 = inlined_call_operand.vmem [shape: f32[8,64], index: 6, kind: input, shape index: {}]   ;;  %s2318_s7 = inlined_call_operand.vmem [shape: f32[24,64], index: 7, kind: input, shape index: {}]   ;;  %s2319_s8 = inlined_call_operand.vmem [shape: f32[256,128], index: 8, kind: input, shape index: {}]   ;;  %s2320_s9 = inlined_call_operand.vmem [shape: f32[1,128], index: 9, kind: input, shape index: {}]   ;;  %s2321_s10 = inlined_call_operand.vmem [shape: f32[128,64], index: 10, kind: input, shape index: {}]   ;;  %s2322_s11 = inlined_call_operand.vmem [shape: f32[1,64], index: 11, kind: input, shape index: {}]   ;;  %s2323_s12 = inlined_call_operand.vmem [shape: f32[64,128], index: 12, kind: input, shape index: {}]   ;;  %s2324_s13 = inlined_call_operand.vmem [shape: f32[1,128], index: 13, kind: input, shape index: {}]   ;;  %s2325_s14 = inlined_call_operand.vmem [shape: f32[48,128], index: 14, kind: output, shape index: {}]  }
   0x1 LB: > { %s1696_s30 = sadd.s32 4294967295, %s1805_s29   ;;  %p1700_p0 = scmp.ge.s32.totalorder %s1805_s29, 1  ;;  %s1805_s29 = sphi %s1887_s29, %s24_s29  }
   0x2   : > { %p446_p1 = scmp.lt.s32.totalorder %s1805_s29, 4 }
   0x4   : > { %p447_p2 = pnand %p1700_p0, %p446_p1 }
   0x5   : > { %s1701_s15 = sshll.u32 (!%p447_p2), %s1696_s30, 1  ;;  %s1809_s19 = smov (!%p447_p2), 64  }
   0x6   : > { %450 = sbr.rel (%p447_p2) target bundleno = 1516 (0x5ec), region = 76  ;;  %p508_p3 = scmp.lt.s32.totalorder (!%p447_p2), %s1701_s15, 5 }
   0xb   : > { %v551_v0 = vld [vmem:[%s2315_s4 + $0x60] sm:$0xff]  ;;  %v550_v1 = vld [vmem:[%s2315_s4 + $0x58] sm:$0xff]  ;;  %v549_v2 = vld [vmem:[%s2315_s4 + $0x50] sm:$0xff]  ;;  %v1807_v3 = vmov 0   ;;  %s2327_s15 = smov (!%p508_p3, %s1701_s15), 5  ;;  %vm642_vm0 = vcmask 850944  }
   0xc   : > { %1760 = vset.pattern.permute.xlu1 %v1807_v3  ;;  %1759 = vset.pattern.permute.xlu0 %v1807_v3  ;;  %v576_v4 = vpack.c.bf16 %v551_v0, %v551_v0  ;;  %v575_v5 = vpack.c.bf16 %v550_v1, %v550_v1  ;;  %v574_v6 = vpack.c.bf16 %v549_v2, %v549_v2  ;;  %v548_v7 = vld [vmem:[%s2315_s4 + $0x48] sm:$0xff]  ;;  %v547_v8 = vld [vmem:[%s2315_s4 + $0x40] sm:$0xff]  ;;  %v546_v9 = vld [vmem:[%s2315_s4 + $0x38] sm:$0xff]  ;;  %s1921_s18 = sshll.u32 %s2327_s15, 3  ;;  %vm759_vm1 = vcmask 64512  }
   0xd   : > { %1761 = vset.pattern.permute.xlu2 %v1807_v3  ;;  %v573_v10 = vpack.c.bf16 %v548_v7, %v548_v7  ;;  %v572_v11 = vpack.c.bf16 %v547_v8, %v547_v8  ;;  %v571_v12 = vpack.c.bf16 %v546_v9, %v546_v9  ;;  %v545_v13 = vld [vmem:[%s2315_s4 + $0x30] sm:$0xff]  ;;  %v544_v14 = vld [vmem:[%s2315_s4 + $0x28] sm:$0xff]  ;;  %s1927_s21 = scalar_lea.vmem %s2312_s1, %s1921_s18  ;;  %s1933_s24 = scalar_lea.vmem %s2311_s0, %s1921_s18  ;;  %v543_v41 = vld [vmem:[%s2315_s4 + $0x20] sm:$0xff]  ;;  %vm970_vm9 = vcmask 195584  }
   0xe   : > { %v589_v15 = vunpack.c.l.bf16 %v576_v4  ;;  %v588_v16 = vunpack.c.l.bf16 %v575_v5  ;;  %v587_v17 = vunpack.c.l.bf16 %v574_v6  ;;  %v570_v18 = vpack.c.bf16 %v545_v13, %v545_v13  ;;  %v740_v28 = vld [vmem:[%s1927_s21] sm:$0xff]  ;;  %s1945_s26 = scalar_lea.vmem %s2313_s2, %s1921_s18  ;;  %v542_v42 = vld [vmem:[%s2315_s4 + $0x18] sm:$0xff]  ;;  %v541_v47 = vld [vmem:[%s2315_s4 + $0x10] sm:$0xff]  ;;  %s2303_s17 = scalar_lea.vmem %s2325_s14, %s1921_s18 }
   0xf   : > { %v586_v19 = vunpack.c.l.bf16 %v573_v10  ;;  %v585_v20 = vunpack.c.l.bf16 %v572_v11  ;;  %v1919_v21 = vunpack.c.l.bf16 %v571_v12  ;;  %v569_v22 = vpack.c.bf16 %v544_v14, %v544_v14  ;;  %v537_v29 = vld [vmem:[%s1933_s24] sm:$0xff]  ;;  %744 = vperm.xlu0 %1759, %v740_v28   ;;  %v840_v36 = vld [vmem:[%s1945_s26 + $0x8] sm:$0xff] }
  0x10   : > { %v602_v23 = vsub.f32 %v551_v0, %v589_v15  ;;  %675 = vmatpush.msra.mxu1 %v589_v15  ;;  %v601_v24 = vsub.f32 %v550_v1, %v588_v16  ;;  %v600_v25 = vsub.f32 %v549_v2, %v587_v17  ;;  %v1947_v33 = vunpack.c.l.bf16 %v570_v18  ;;  %555 = vperm.xlu1 %1760, %v537_v29   ;;  %v540_v48 = vld [vmem:[%s2315_s4 + $0x8] sm:$0xff]  ;;  %v839_v60 = vld [vmem:[%s1945_s26] sm:$0xff] }
  0x11   : > { %v1935_v26 = vsub.f32 %v548_v7, %v586_v19  ;;  %v1937_v27 = vsub.f32 %v547_v8, %v585_v20  ;;  %v1950_v34 = vsub.f32 %v546_v9, %v1919_v21  ;;  %v1952_v35 = vunpack.c.l.bf16 %v569_v22  ;;  %846 = vperm.xlu2 %1761, %v840_v36   ;;  %v741_v51 = vld [vmem:[%s1927_s21 + $0x8] sm:$0xff]  ;;  %v742_v28 = vld [vmem:[%s2316_s5] sm:$0xff] }
  0x12   : > { %v615_v30 = vpack.c.bf16 %v602_v23, %v602_v23  ;;  %v614_v31 = vpack.c.bf16 %v601_v24, %v601_v24  ;;  %676 = vmatpush.msra.mxu1 %v588_v16  ;;  %v613_v32 = vpack.c.bf16 %v600_v25, %v600_v25  ;;  %v1966_v46 = vsub.f32 %v545_v13, %v1947_v33  ;;  %v538_v52 = vld [vmem:[%s1933_s24 + $0x8] sm:$0xff]  ;;  %s529_s24 = scalar_lea.vmem %s2314_s3, %s1921_s18 }
  0x13   : > { %v612_v39 = vpack.c.bf16 %v1935_v26, %v1935_v26  ;;  %v611_v40 = vpack.c.bf16 %v1937_v27, %v1937_v27  ;;  %v610_v49 = vpack.c.bf16 %v1950_v34, %v1950_v34  ;;  %v1977_v50 = vsub.f32 %v544_v14, %v1952_v35  ;;  %v937_v12 = vld [vmem:[%s529_s24] sm:$0xff]  ;;  %v938_v13 = vld [vmem:[%s529_s24 + $0x8] sm:$0xff] }
  0x14   : > { %v628_v37 = vunpack.c.l.bf16 %v615_v30  ;;  %v627_v38 = vunpack.c.l.bf16 %v614_v31  ;;  %677 = vmatpush.msra.mxu1 %v587_v17  ;;  %v626_v43 = vunpack.c.l.bf16 %v613_v32  ;;  %v568_v55 = vpack.c.bf16 %v543_v41, %v543_v41 }
  0x15   : > { %v625_v53 = vunpack.c.l.bf16 %v612_v39  ;;  %v567_v56 = vpack.c.bf16 %v542_v42, %v542_v42  ;;  %v624_v57 = vunpack.c.l.bf16 %v611_v40  ;;  %v566_v58 = vpack.c.bf16 %v541_v47, %v541_v47 }
  0x16   : > { %652 = vmatpush.msra.mxu0 %v628_v37  ;;  %v641_v44 = vsub.f32 %v602_v23, %v628_v37  ;;  %678 = vmatpush.msra.mxu1 %v586_v19  ;;  %v640_v45 = vsub.f32 %v601_v24, %v627_v38  ;;  %v639_v54 = vsub.f32 %v600_v25, %v626_v43  ;;  %v581_v63 = vunpack.c.l.bf16 %v568_v55 }
  0x17   : > { %v565_v59 = vpack.c.bf16 %v540_v48, %v540_v48  ;;  %v638_v61 = vsub.f32 %v1935_v26, %v625_v53  ;;  %v609_v62 = vpack.c.bf16 %v1966_v46, %v1966_v46  ;;  %v580_v0 = vunpack.c.l.bf16 %v567_v56  ;;  %747 = vperm.xlu0 %1759, %v741_v51   ;;  %v940_v51 = vld [vmem:[%s2318_s7 + $0x8] sm:$0xff] }
  0x18   : > { %653 = vmatpush.msra.mxu0 %v627_v38  ;;  %718 = vmatpush.msra.mxu2 %v641_v44  ;;  %v623_v1 = vunpack.c.l.bf16 %v610_v49  ;;  %v637_v2 = vsub.f32 %v1937_v27, %v624_v57  ;;  %v579_v3 = vunpack.c.l.bf16 %v566_v58  ;;  %v608_v4 = vpack.c.bf16 %v1977_v50, %v1977_v50  ;;  %v539_v27 = vld [vmem:[%s2315_s4] sm:$0xff] }
  0x19   : > { %679 = vmatpush.msra.mxu1 %v585_v20  ;;  %558 = vperm.xlu1 %1760, %v538_v52   ;;  %v594_v5 = vsub.f32 %v543_v41, %v581_v63  ;;  %v593_v6 = vsub.f32 %v542_v42, %v580_v0  ;;  %v578_v7 = vunpack.c.l.bf16 %v565_v59  ;;  %v622_v8 = vunpack.c.l.bf16 %v609_v62  ;;  %v841_v42 = vld [vmem:[%s2317_s6] sm:$0xff] }
  0x1a   : > { %654 = vmatpush.msra.mxu0 %v626_v43  ;;  %719 = vmatpush.msra.mxu2 %v640_v45  ;;  %v636_v9 = vsub.f32 %v1950_v34, %v623_v1  ;;  %v592_v11 = vsub.f32 %v541_v47, %v579_v3  ;;  %v621_v14 = vunpack.c.l.bf16 %v608_v4  ;;  %v564_v29 = vpack.c.bf16 %v539_v27, %v539_v27 }
  0x1b   : > { %843 = vperm.xlu2 %1761, %v839_v60   ;;  %680 = vmatpush.msra.mxu1 %v1919_v21  ;;  %v607_v10 = vpack.c.bf16 %v594_v5, %v594_v5  ;;  %v606_v15 = vpack.c.bf16 %v593_v6, %v593_v6  ;;  %v591_v16 = vsub.f32 %v540_v48, %v578_v7  ;;  %v552_v49 = vlaneseq }
  0x1c   : > { %655 = vmatpush.msra.mxu0 %v625_v53  ;;  %720 = vmatpush.msra.mxu2 %v639_v54  ;;  %v635_v17 = vsub.f32 %v1966_v46, %v622_v8  ;;  %v605_v19 = vpack.c.bf16 %v592_v11, %v592_v11  ;;  %v634_v20 = vsub.f32 %v1977_v50, %v621_v14  ;;  %v577_v31 = vunpack.c.l.bf16 %v564_v29  ;;  %v941_v50 = vld [vmem:[%s2318_s7 + $0x10] sm:$0xff]  ;;  %v939_v54 = vld [vmem:[%s2318_s7] sm:$0xff] }
  0x1d   : > { %681 = vmatpush.msra.mxu1 %v1947_v33  ;;  %v620_v18 = vunpack.c.l.bf16 %v607_v10  ;;  %v619_v21 = vunpack.c.l.bf16 %v606_v15  ;;  %v604_v22 = vpack.c.bf16 %v591_v16, %v591_v16  ;;  %v753_v30 = vpack.c.bf16 %v742_v28, %v742_v28 }
  0x1e   : > { %656 = vmatpush.msra.mxu0 %v624_v57  ;;  %721 = vmatpush.msra.mxu2 %v638_v61  ;;  %v618_v24 = vunpack.c.l.bf16 %v605_v19  ;;  %v590_v33 = vsub.f32 %v539_v27, %v577_v31  ;;  %v852_v43 = vpack.c.bf16 %v841_v42, %v841_v42  ;;  %v2013_v52 = vand.u32 127, %v552_v49  ;;  %v1086_v49 = vld [vmem:[%s2319_s8 + $0x60] sm:$0xff] }
  0x1f   : > { %682 = vmatpush.msra.mxu1 %v1952_v35  ;;  %943 = vperm.xlu0 %1759, %v937_v12   ;;  %v633_v23 = vsub.f32 %v594_v5, %v620_v18  ;;  %v632_v25 = vsub.f32 %v593_v6, %v619_v21  ;;  %v617_v26 = vunpack.c.l.bf16 %v604_v22  ;;  %v754_v32 = vunpack.c.l.bf16 %v753_v30 }
  0x20   : > { %657 = vmatpush.msra.mxu0 %v623_v1  ;;  %722 = vmatpush.msra.mxu2 %v637_v2  ;;  %v603_v35 = vpack.c.bf16 %v590_v33, %v590_v33  ;;  %v631_v38 = vsub.f32 %v592_v11, %v618_v24  ;;  %v853_v44 = vunpack.c.l.bf16 %v852_v43  ;;  %v954_v53 = vpack.c.bf16 %v941_v50, %v941_v50  ;;  %v1105_v43 = vld [vmem:[%s2319_s8 + $0xf8] sm:$0xff] }
  0x21   : > { %946 = vperm.xlu1 %1760, %v938_v13   ;;  %683 = vmatpush.msra.mxu1 %v581_v63  ;;  %v755_v34 = vsub.f32 %v742_v28, %v754_v32  ;;  %v630_v40 = vsub.f32 %v591_v16, %v617_v26  ;;  %v953_v56 = vpack.c.bf16 %v940_v51, %v940_v51  ;;  %v1808_v62 = vmov 0.0  }
  0x22   : > { %658 = vmatpush.msra.mxu0 %v622_v8  ;;  %723 = vmatpush.msra.mxu2 %v636_v9  ;;  %v616_v37 = vunpack.c.l.bf16 %v603_v35  ;;  %v854_v45 = vsub.f32 %v841_v42, %v853_v44  ;;  %v957_v60 = vunpack.c.l.bf16 %v954_v53  ;;  %v952_v61 = vpack.c.bf16 %v939_v54, %v939_v54  ;;  %v1089_v42 = vld [vmem:[%s2319_s8 + $0x78] sm:$0xff]  ;;  %v1084_v53 = vld [vmem:[%s2319_s8 + $0x50] sm:$0xff] }
  0x23   : > { %684 = vmatpush.msra.mxu1 %v580_v0  ;;  %v756_v36 = vpack.c.bf16 %v755_v34, %v755_v34  ;;  %v956_v1 = vunpack.c.l.bf16 %v953_v56  ;;  %v1083_v56 = vld [vmem:[%s2319_s8 + $0x48] sm:$0xff]  ;;  %vm1069_vm11 = vcmask 523264  }
  0x24   : > { %659 = vmatpush.msra.mxu0 %v621_v14  ;;  %724 = vmatpush.msra.mxu2 %v635_v17  ;;  %v629_v41 = vsub.f32 %v590_v33, %v616_v37  ;;  %v855_v46 = vpack.c.bf16 %v854_v45, %v854_v45  ;;  %v960_v2 = vsub.f32 %v941_v50, %v957_v60  ;;  %v1102_v50 = vld [vmem:[%s2319_s8 + $0xe0] sm:$0xff] }
  0x25   : > { %685 = vmatpush.msra.mxu1 %v579_v3  ;;  %v757_v39 = vunpack.c.l.bf16 %v756_v36  ;;  %v955_v3 = vunpack.c.l.bf16 %v952_v61  ;;  %v959_v4 = vsub.f32 %v940_v51, %v956_v1  ;;  %v1085_v51 = vld [vmem:[%s2319_s8 + $0x58] sm:$0xff] }
  0x26   : > { %660 = vmatpush.msra.mxu0 %v620_v18  ;;  %725 = vmatpush.msra.mxu2 %v634_v20  ;;  %v856_v47 = vunpack.c.l.bf16 %v855_v46  ;;  %v1104_v46 = vld [vmem:[%s2319_s8 + $0xf0] sm:$0xff]  ;;  %v1097_v61 = vld [vmem:[%s2319_s8 + $0xb8] sm:$0xff] }
  0x27   : > { %686 = vmatpush.msra.mxu1 %v578_v7  ;;  %781 = vmatpush.msra.mxu3 %v757_v39  ;;  %v758_v59 = vsub.f32 %v755_v34, %v757_v39  ;;  %v963_v7 = vpack.c.bf16 %v960_v2, %v960_v2  ;;  %v958_v8 = vsub.f32 %v939_v54, %v955_v3  ;;  %v1100_v54 = vld [vmem:[%s2319_s8 + $0xd0] sm:$0xff] }
  0x28   : > { %661 = vmatpush.msra.mxu0 %v619_v21  ;;  %726 = vmatpush.msra.mxu2 %v633_v23  ;;  %v857_v48 = vsub.f32 %v854_v45, %v856_v47  ;;  %v962_v12 = vpack.c.bf16 %v959_v4, %v959_v4 }
  0x29   : > { %687 = vmatpush.msra.mxu1 %v577_v31  ;;  %804 = vmatpush.msrb.mxu3 %v754_v32  ;;  %v966_v13 = vunpack.c.l.bf16 %v963_v7  ;;  %v961_v14 = vpack.c.bf16 %v958_v8, %v958_v8 }
  0x2a   : > { %662 = vmatpush.msra.mxu0 %v618_v24  ;;  %727 = vmatpush.msra.mxu2 %v632_v25  ;;  %v965_v15 = vunpack.c.l.bf16 %v962_v12  ;;  %v1077_v12 = vld [vmem:[%s2319_s8 + $0x18] sm:$0xff] }
  0x2b   : > { %1745 = vmatpush.msrb.mxu1 %v856_v47  ;;  %v969_v18 = vsub.f32 %v960_v2, %v966_v13  ;;  %v964_v19 = vunpack.c.l.bf16 %v961_v14  ;;  %v1076_v14 = vld [vmem:[%s2319_s8 + $0x10] sm:$0xff] }
  0x2c   : > { %663 = vmatpush.msra.mxu0 %v617_v26  ;;  %728 = vmatpush.msra.mxu2 %v631_v38  ;;  %v968_v20 = vsub.f32 %v959_v4, %v965_v15 }
  0x2d   : > { %v967_v22 = vsub.f32 %v958_v8, %v964_v19 }
  0x2e   : > { %664 = vmatpush.msra.mxu0 %v616_v37  ;;  %729 = vmatpush.msra.mxu2 %v630_v40 }
  0x30   : > { %730 = vmatpush.msra.mxu2 %v629_v41  ;;  %879 = vmatpush.msrb.mxu0 %v856_v47  ;;  %v1087_v47 = vld [vmem:[%s2319_s8 + $0x68] sm:$0xff] }
  0x32   : > { %927 = vmatpush.msrb.mxu2 %v857_v48  ;;  %v1103_v48 = vld [vmem:[%s2319_s8 + $0xe8] sm:$0xff] }
  0x6b   : > { %v847_v55 = vpop.permute.xlu2 %846 }
  0x6c   : > { %vm849_vm6 = vcmp.eq.s32.totalorder %v2013_v52, %v847_v55 }
  0x6d   : > { %v851_v16 = vsel %vm849_vm6, 1.0, %v1808_v62 }
  0x75   : > { %v844_v11 = vpop.permute.xlu2 %843 }
  0x76   : > { %vm848_vm7 = vcmp.eq.s32.totalorder %v2013_v52, %v844_v11 }
  0x77   : > { %v850_v17 = vsel %vm848_vm7, 1.0, %v1808_v62 }
  0x81   : > { %v745_v57 = vpop.permute.xlu0 %744 }
  0x82   : > { %v556_v58 = vpop.permute.xlu1 %555  ;;  %vm749_vm2 = vcmp.eq.s32.totalorder %v2013_v52, %v745_v57  ;;  %v1099_v57 = vld [vmem:[%s2319_s8 + $0xc8] sm:$0xff] }
  0x83   : > { %vm560_vm3 = vcmp.eq.s32.totalorder %v2013_v52, %v556_v58  ;;  %v2020_v63 = vsel %vm749_vm2, 1.0, %v1808_v62  ;;  %v1082_v58 = vld [vmem:[%s2319_s8 + $0x40] sm:$0xff] }
  0x84   : > { %v562_v0 = vsel %vm560_vm3, 1.0, %v1808_v62  ;;  %1717 = vmatmul.msk.f32.vlgmr.msra.gmra.mxu3 %vm759_vm1, %v2020_v63 }
  0x85   : > { %1711 = vmatmul.msk.f32.vlgmr.msra.gmra.mxu0 %vm642_vm0, %v562_v0  ;;  %1713 = vmatmul.msk.f32.vlgmr.msra.gmra.mxu1 %vm642_vm0, %v562_v0 }
  0x86   : > { %1715 = vmatmul.msk.f32.vlgmr.msra.gmra.mxu2 %vm642_vm0, %v562_v0  ;;  %829 = vmatpush.msra.mxu3 %v758_v59  ;;  %v1098_v59 = vld [vmem:[%s2319_s8 + $0xc0] sm:$0xff]  ;;  %v1096_v0 = vld [vmem:[%s2319_s8 + $0xb0] sm:$0xff] }
  0x87   : > { %1013 = vmatpush.msra.mxu0 %v957_v60  ;;  %902 = vmatpush.msra.mxu1 %v853_v44  ;;  %v1088_v44 = vld [vmem:[%s2319_s8 + $0x70] sm:$0xff]  ;;  %v1081_v60 = vld [vmem:[%s2319_s8 + $0x38] sm:$0xff] }
  0x88   : > { %1110 = vmatpush.msra.mxu2 %v1089_v42 }
  0x89   : > { %1014 = vmatpush.msra.mxu0 %v956_v1  ;;  %v748_v5 = vpop.permute.xlu0 %747 }
  0x8a   : > { %vm750_vm4 = vcmp.eq.s32.totalorder %v2013_v52, %v748_v5  ;;  %1111 = vmatpush.msra.mxu2 %v1088_v44  ;;  %v1079_v5 = vld [vmem:[%s2319_s8 + $0x28] sm:$0xff] }
  0x8b   : > { %v559_v6 = vpop.permute.xlu1 %558  ;;  %1015 = vmatpush.msra.mxu0 %v955_v3  ;;  %v752_v9 = vsel %vm750_vm4, 1.0, %v1808_v62 }
  0x8c   : > { %vm561_vm5 = vcmp.eq.s32.totalorder %v2013_v52, %v559_v6  ;;  %1718 = vmatmul.msk.f32.gmra.mxu3 %vm759_vm1, %v752_v9  ;;  %1112 = vmatpush.msra.mxu2 %v1087_v47  ;;  %v1095_v6 = vld [vmem:[%s2319_s8 + $0xa8] sm:$0xff] }
  0x8d   : > { %v563_v10 = vsel %vm561_vm5, 1.0, %v1808_v62 }
  0x8e   : > { %1712 = vmatmul.msk.f32.gmra.mxu0 %vm642_vm0, %v563_v10  ;;  %1714 = vmatmul.msk.f32.gmra.mxu1 %vm642_vm0, %v563_v10 }
  0x8f   : > { %1716 = vmatmul.msk.f32.gmra.mxu2 %vm642_vm0, %v563_v10  ;;  %v1094_v10 = vld [vmem:[%s2319_s8 + $0xa0] sm:$0xff] }
  0x90   : > { %1113 = vmatpush.msra.mxu2 %v1086_v49 }
  0x91   : > { %v944_v21 = vpop.permute.xlu0 %943 }
  0x92   : > { %vm948_vm8 = vcmp.eq.s32.totalorder %v2013_v52, %v944_v21  ;;  %1114 = vmatpush.msra.mxu2 %v1085_v51 }
  0x93   : > { %v950_v23 = vsel %vm948_vm8, 1.0, %v1808_v62  ;;  %v947_v24 = vpop.permute.xlu1 %946 }
  0x94   : > { %1719 = vmatmul.msk.f32.vlgmr.msrb.gmra.mxu3 %vm759_vm1, %v2020_v63  ;;  %vm949_vm10 = vcmp.eq.s32.totalorder %v2013_v52, %v947_v24  ;;  %v1101_v52 = vld [vmem:[%s2319_s8 + $0xd8] sm:$0xff]  ;;  %1115 = vmatpush.msra.mxu2 %v1084_v53  ;;  %v1075_v24 = vld [vmem:[%s2319_s8 + $0x8] sm:$0xff] }
  0x95   : > { %990 = vmatpush.msrb.mxu3 %v966_v13  ;;  %v951_v25 = vsel %vm949_vm10, 1.0, %v1808_v62  ;;  %v1093_v13 = vld [vmem:[%s2319_s8 + $0x98] sm:$0xff] }
  0x96   : > { %1723 = vmatmul.msk.f32.vlgmr.msrb.gmra.mxu0 %vm759_vm1, %v850_v17  ;;  %1724 = vmatmul.msk.f32.vlgmr.msrb.gmra.mxu1 %vm759_vm1, %v851_v16 }
  0x97   : > { %1727 = vmatmul.msk.f32.vlgmr.msrb.gmra.mxu2 %vm759_vm1, %v850_v17  ;;  %1041 = vmatpush.msrb.mxu1 %v969_v18 }
  0x98   : > { %991 = vmatpush.msrb.mxu3 %v965_v15  ;;  %1116 = vmatpush.msra.mxu2 %v1083_v56  ;;  %v1092_v15 = vld [vmem:[%s2319_s8 + $0x90] sm:$0xff] }
  0x99   : > { %1042 = vmatpush.msrb.mxu1 %v968_v20 }
  0x9a   : > { %992 = vmatpush.msrb.mxu3 %v964_v19  ;;  %1117 = vmatpush.msra.mxu2 %v1082_v58 }
  0x9b   : > { %1043 = vmatpush.msrb.mxu1 %v967_v22 }
  0x9c   : > { %1720 = vmatmul.msk.f32.gmra.mxu3 %vm759_vm1, %v752_v9  ;;  %1118 = vmatpush.msra.mxu2 %v1081_v60 }
  0x9e   : > { %1725 = vmatmul.msk.f32.vlgmr.msra.gmra.mxu1 %vm759_vm1, %v850_v17  ;;  %1731 = vmatmul.msk.f32.vlgmr.msra.gmra.mxu0 %vm970_vm9, %v950_v23 }
  0x9f   : > { %1728 = vmatmul.msk.f32.gmra.mxu2 %vm759_vm1, %v851_v16 }
  0xa4   : > { %1721 = vmatmul.msk.f32.vlgmr.msra.gmra.mxu3 %vm759_vm1, %v2020_v63  ;;  %v1080_v63 = vld [vmem:[%s2319_s8 + $0x30] sm:$0xff] }
  0xa5   : > { %1133 = vmatpush.msra.mxu3 %v1105_v43  ;;  %1119 = vmatpush.msra.mxu2 %v1080_v63 }
  0xa6   : > { %1726 = vmatmul.msk.f32.gmra.mxu1 %vm759_vm1, %v851_v16  ;;  %1732 = vmatmul.msk.f32.gmra.mxu0 %vm970_vm9, %v951_v25 }
  0xa7   : > { %1134 = vmatpush.msra.mxu3 %v1104_v46  ;;  %1120 = vmatpush.msra.mxu2 %v1079_v5 }
  0xa9   : > { %1135 = vmatpush.msra.mxu3 %v1103_v48  ;;  %v1772_v48 = vld [vmem:[%s2320_s9] ss:$0 sm:$0xff] }
  0xab   : > { %1136 = vmatpush.msra.mxu3 %v1102_v50 }
  0xac   : > { %1722 = vmatmul.msk.f32.gmra.mxu3 %vm759_vm1, %v752_v9  ;;  %v1078_v9 = vld [vmem:[%s2319_s8 + $0x20] sm:$0xff] }
  0xad   : > { %1137 = vmatpush.msra.mxu3 %v1101_v52  ;;  %1121 = vmatpush.msra.mxu2 %v1078_v9 }
  0xae   : > { %1733 = vmatmul.msk.f32.vlgmr.msrb.gmra.mxu1 %vm970_vm9, %v950_v23 }
  0xaf   : > { %1138 = vmatpush.msra.mxu3 %v1100_v54  ;;  %1122 = vmatpush.msra.mxu2 %v1077_v12 }
  0xb1   : > { %1139 = vmatpush.msra.mxu3 %v1099_v57  ;;  %1123 = vmatpush.msra.mxu2 %v1076_v14 }
  0xb3   : > { %1140 = vmatpush.msra.mxu3 %v1098_v59  ;;  %1124 = vmatpush.msra.mxu2 %v1075_v24  ;;  %v1299_v24 = vld [vmem:[%s2321_s10 + $0x40] sm:$0xff] }
  0xb4   : > { %1729 = vmatmul.msk.f32.vlgmr.msrb.gmra.mxu3 %vm970_vm9, %v950_v23 }
  0xb5   : > { %1141 = vmatpush.msra.mxu3 %v1097_v61 }
  0xb6   : > { %1734 = vmatmul.msk.f32.gmra.mxu1 %vm970_vm9, %v951_v25 }
  0xb7   : > { %1142 = vmatpush.msra.mxu3 %v1096_v0 }
  0xb9   : > { %1143 = vmatpush.msra.mxu3 %v1095_v6 }
  0xbb   : > { %1144 = vmatpush.msra.mxu3 %v1094_v10 }
  0xbc   : > { %1730 = vmatmul.msk.f32.gmra.mxu3 %vm970_vm9, %v951_v25  ;;  %v1091_v25 = vld [vmem:[%s2319_s8 + $0x88] sm:$0xff] }
  0xbd   : > { %1145 = vmatpush.msra.mxu3 %v1093_v13  ;;  %v1305_v13 = vld [vmem:[%s2321_s10 + $0x70] sm:$0xff] }
  0xbf   : > { %1146 = vmatpush.msra.mxu3 %v1092_v15  ;;  %v1304_v15 = vld [vmem:[%s2321_s10 + $0x68] sm:$0xff] }
  0xc1   : > { %1147 = vmatpush.msra.mxu3 %v1091_v25 }
 0x102   : > { %v666_v26 = vpop.f32.mrf.mxu0  ;;  %v689_v27 = vpop.f32.mrf.mxu1 }
 0x103   : > { %v2055_v28 = vadd.f32 %v689_v27, %v666_v26  ;;  %v1074_v26 = vld [vmem:[%s2319_s8] sm:$0xff] }
 0x104   : > { %v1090_v27 = vld [vmem:[%s2319_s8 + $0x80] sm:$0xff]  ;;  %1125 = vmatpush.msra.mxu2 %v1074_v26  ;;  %v1298_v26 = vld [vmem:[%s2321_s10 + $0x38] sm:$0xff] }
 0x105   : > { %1148 = vmatpush.msra.mxu3 %v1090_v27 }
 0x107   : > { %v783_v29 = vpop.f32.mrf.mxu3 }
 0x10b   : > { %v669_v30 = vpop.f32.mrf.mxu0  ;;  %v692_v31 = vpop.f32.mrf.mxu1 }
 0x10c   : > { %v2057_v32 = vadd.f32 %v692_v31, %v669_v30 }
 0x10f   : > { %v2059_v33 = vpop.f32.mrf.mxu3 }
 0x113   : > { %v884_v34 = vpop.f32.mrf.mxu1  ;;  %v881_v36 = vpop.f32.mrf.mxu0 }
 0x117   : > { %v806_v35 = vpop.f32.mrf.mxu3 }
 0x118   : > { %v807_v3 = vadd.f32 %v806_v35, %v783_v29  ;;  %v732_v29 = vpop.f32.mrf.mxu2 }
 0x11b   : > { %v904_v37 = vpop.f32.mrf.mxu1  ;;  %v1017_v62 = vpop.f32.mrf.mxu0 }
 0x11c   : > { %v2061_v38 = vadd.f32 %v904_v37, %v881_v36 }
 0x11f   : > { %v2063_v39 = vpop.f32.mrf.mxu3 }
 0x120   : > { %v810_v18 = vadd.f32 %v2063_v39, %v2059_v33  ;;  %v735_v30 = vpop.f32.mrf.mxu2 }
 0x121   : > { %v739_v44 = vadd.f32 %v735_v30, %v2057_v32 }
 0x123   : > { %v907_v40 = vpop.f32.mrf.mxu1  ;;  %v1020_v16 = vpop.f32.mrf.mxu0 }
 0x124   : > { %v2065_v41 = vadd.f32 %v907_v40, %v884_v34  ;;  %v738_v34 = vadd.f32 %v732_v29, %v2055_v28  ;;  %v1297_v29 = vld [vmem:[%s2321_s10 + $0x30] sm:$0xff] }
 0x127   : > { %v831_v45 = vpop.f32.mrf.mxu3 }
 0x128   : > { %v837_v7 = vadd.f32 %v831_v45, %v807_v3  ;;  %v929_v31 = vpop.f32.mrf.mxu2 }
 0x129   : > { %v935_v35 = vadd.f32 %v929_v31, %v2061_v38  ;;  %v1296_v31 = vld [vmem:[%s2321_s10 + $0x28] sm:$0xff] }
 0x12b   : > { %v1045_v1 = vpop.f32.mrf.mxu1 }
 0x12f   : > { %v834_v55 = vpop.f32.mrf.mxu3 }
 0x130   : > { %v838_v21 = vadd.f32 %v834_v55, %v810_v18  ;;  %v932_v42 = vpop.f32.mrf.mxu2  ;;  %v1810_v55 = vmov 128.0  }
 0x131   : > { %v936_v45 = vadd.f32 %v932_v42, %v2065_v41  ;;  %1775 = vrcp.f32 %v1810_v55  ;;  %v1294_v42 = vld [vmem:[%s2321_s10 + $0x18] sm:$0xff] }
 0x133   : > { %v1048_v20 = vpop.f32.mrf.mxu1 }
 0x137   : > { %v994_v2 = vpop.f32.mrf.mxu3  ;;  %v1776_v56 = vpop.eup %1775 }
 0x138   : > { %v1018_v4 = vadd.f32 %v1017_v62, %v994_v2  ;;  %v1161_v57 = vmul.f32 128.0, %v1776_v56  ;;  %vm1165_vm12 = vweird.f32 %v1776_v56 }
 0x13a   : > { %v1051_v8 = vadd.f32 %v1045_v1, %v1018_v4  ;;  %v1162_v58 = vsub.f32 1.0, %v1161_v57 }
 0x13c   : > { %v1762_v11 = vpack.i.bf16 %v1051_v8, %v837_v7  ;;  %v1163_v59 = vmul.f32 %v1776_v56, %v1162_v58 }
 0x13e   : > { %1763 = vrot.lane.b32.xlu2 %v1762_v11, %s1809_s19  ;;  %v1164_v60 = vadd.f32 %v1776_v56, %v1163_v59  ;;  %v1306_v11 = vld [vmem:[%s2321_s10 + $0x78] sm:$0xff] }
 0x13f   : > { %v997_v17 = vpop.f32.mrf.mxu3  ;;  %1311 = vmatpush.msrb.mxu0 %v1306_v11 }
 0x140   : > { %v1021_v19 = vadd.f32 %v1020_v16, %v997_v17  ;;  %v1166_v61 = vsel %vm1165_vm12, %v1776_v56, %v1164_v60  ;;  %v1303_v17 = vld [vmem:[%s2321_s10 + $0x60] sm:$0xff] }
 0x141   : > { %1312 = vmatpush.msrb.mxu0 %v1305_v13 }
 0x142   : > { %v1052_v22 = vadd.f32 %v1048_v20, %v1021_v19  ;;  %v1302_v19 = vld [vmem:[%s2321_s10 + $0x58] sm:$0xff]  ;;  %v1301_v20 = vld [vmem:[%s2321_s10 + $0x50] sm:$0xff] }
 0x143   : > { %1313 = vmatpush.msrb.mxu0 %v1304_v15 }
 0x144   : > { %v1767_v23 = vpack.i.bf16 %v1052_v22, %v838_v21  ;;  %v1300_v22 = vld [vmem:[%s2321_s10 + $0x48] sm:$0xff] }
 0x145   : > { %1314 = vmatpush.msrb.mxu0 %v1303_v17 }
 0x146   : > { %1768 = vrot.lane.b32.xlu0 %v1767_v23, %s1809_s19 }
 0x147   : > { %1315 = vmatpush.msrb.mxu0 %v1302_v19 }
 0x149   : > { %1316 = vmatpush.msrb.mxu0 %v1301_v20 }
 0x14b   : > { %1317 = vmatpush.msrb.mxu0 %v1300_v22 }
 0x14d   : > { %1318 = vmatpush.msrb.mxu0 %v1299_v24 }
 0x14f   : > { %1319 = vmatpush.msrb.mxu0 %v1298_v26 }
 0x151   : > { %1320 = vmatpush.msrb.mxu0 %v1297_v29 }
 0x153   : > { %1321 = vmatpush.msrb.mxu0 %v1296_v31 }
 0x198   : > { %v1764_v33 = vpop.permute.xlu2 %1763 }
 0x199   : > { %v1766_v36 = vunpack.i.h.bf16 %v1764_v33  ;;  %v1765_v37 = vunpack.i.l.bf16 %v1764_v33 }
 0x19b   : > { %v1070_v39 = vsel %vm1069_vm11, %v738_v34, %v1765_v37  ;;  %v1072_v40 = vsel %vm1069_vm11, %v935_v35, %v1766_v36  ;;  %v1295_v36 = vld [vmem:[%s2321_s10 + $0x20] sm:$0xff] }
 0x19c   : > { %1126 = vmatmul.f32.vlgmr.msra.gmra.mxu2 %v1070_v39  ;;  %1149 = vmatmul.f32.vlgmr.msra.gmra.mxu3 %v1072_v40 }
 0x19d   : > { %1322 = vmatpush.msrb.mxu0 %v1295_v36 }
 0x19f   : > { %1323 = vmatpush.msrb.mxu0 %v1294_v42 }
 0x1b8   : > { %v1769_v43 = vpop.permute.xlu0 %1768 }
 0x1b9   : > { %v1771_v46 = vunpack.i.h.bf16 %v1769_v43  ;;  %v1770_v47 = vunpack.i.l.bf16 %v1769_v43 }
 0x1bb   : > { %v1071_v28 = vsel %vm1069_vm11, %v739_v44, %v1770_v47  ;;  %v1073_v38 = vsel %vm1069_vm11, %v936_v45, %v1771_v46  ;;  %v1293_v46 = vld [vmem:[%s2321_s10 + $0x10] sm:$0xff] }
 0x1bc   : > { %1129 = vmatmul.f32.gmra.mxu2 %v1071_v28  ;;  %1152 = vmatmul.f32.gmra.mxu3 %v1073_v38  ;;  %v1292_v28 = vld [vmem:[%s2321_s10 + $0x8] sm:$0xff] }
 0x1bd   : > { %1324 = vmatpush.msrb.mxu0 %v1293_v46 }
 0x1bf   : > { %1325 = vmatpush.msrb.mxu0 %v1292_v28 }
 0x21f   : > { %v1127_v49 = vpop.f32.mrf.mxu2  ;;  %v1150_v51 = vpop.f32.mrf.mxu3 }
 0x220   : > { %v1128_v50 = vadd.f32 %v1772_v48, %v1127_v49  ;;  %v1291_v49 = vld [vmem:[%s2321_s10] sm:$0xff] }
 0x221   : > { %1326 = vmatpush.msrb.mxu0 %v1291_v49 }
 0x222   : > { %v1151_v52 = vadd.f32 %v1150_v51, %v1128_v50 }
 0x224   : > { %1156 = vadd.xlane.f32.xlu1 %v1151_v52 }
 0x23f   : > { %v1130_v32 = vpop.f32.mrf.mxu2  ;;  %v1153_v41 = vpop.f32.mrf.mxu3 }
 0x240   : > { %v1131_v53 = vadd.f32 %v1772_v48, %v1130_v32 }
 0x242   : > { %v1154_v54 = vadd.f32 %v1153_v41, %v1131_v53 }
 0x244   : > { %1158 = vadd.xlane.f32.xlu2 %v1154_v54 }
 0x297   : > { %v1157_v62 = vpop.xlane.xlu1 %1156 }
 0x298   : > { %v1167_v63 = vmul.f32 %v1166_v61, %v1157_v62 }
 0x29a   : > { %v1169_v0 = vsub.f32 %v1151_v52, %v1167_v63 }
 0x29c   : > { %v1171_v1 = vmul.f32 %v1169_v0, %v1169_v0 }
 0x29e   : > { %1173 = vadd.xlane.f32.xlu0 %v1171_v1 }
 0x2b7   : > { %v1159_v2 = vpop.xlane.xlu2 %1158 }
 0x2b8   : > { %v1168_v3 = vmul.f32 %v1166_v61, %v1159_v2 }
 0x2ba   : > { %v2176_v4 = vsub.f32 %v1154_v54, %v1168_v3 }
 0x2bc   : > { %v1172_v5 = vmul.f32 %v2176_v4, %v2176_v4 }
 0x2be   : > { %1175 = vadd.xlane.f32.xlu2 %v1172_v5 }
 0x311   : > { %v1174_v6 = vpop.xlane.xlu0 %1173 }
 0x312   : > { %v1177_v7 = vmul.f32 %v1174_v6, %v1166_v61 }
 0x314   : > { %v1179_v8 = vadd.f32 1e-05, %v1177_v7 }
 0x316   : > { %1777 = vrsqrt.f32 %v1179_v8  ;;  %vm1187_vm14 = vweird.f32 %v1179_v8 }
 0x31c   : > { %v1778_v9 = vpop.eup %1777 }
 0x31d   : > { %v1182_v10 = vmul.f32 %v1778_v9, %v1179_v8  ;;  %vm1188_vm13 = vweird.f32 %v1778_v9 }
 0x31e   : > { %vm1189_vm15 = vmor %vm1187_vm14, %vm1188_vm13 }
 0x31f   : > { %v1183_v12 = vmul.f32 %v1778_v9, %v1182_v10 }
 0x321   : > { %v1184_v14 = vmul.f32 0.5, %v1183_v12 }
 0x323   : > { %v1185_v16 = vsub.f32 1.5, %v1184_v14 }
 0x325   : > { %v1186_v18 = vmul.f32 %v1778_v9, %v1185_v16 }
 0x327   : > { %v1190_v21 = vsel %vm1189_vm15, %v1778_v9, %v1186_v18 }
 0x328   : > { %v2201_v23 = vmul.f32 %v1190_v21, %v1169_v0 }
 0x32a   : > { %v2207_v25 = vmul.f32 0.70710677, %v2201_v23  ;;  %v1203_v31 = vmul.f32 0.5, %v2201_v23 }
 0x32c   : > { %v1207_v27 = vmul.f32 %v2207_v25, %v2207_v25 }
 0x32e   : > { %v1208_v30 = vmin.f32 %v1207_v27, 16.0 }
 0x330   : > { %v1209_v33 = vmul.f32 2.1237322e-06, %v1208_v30  ;;  %v1220_v34 = vmul.f32 3.8918573e-05, %v1208_v30 }
 0x331   : > { %v1176_v35 = vpop.xlane.xlu2 %1175 }
 0x332   : > { %v1178_v37 = vmul.f32 %v1176_v35, %v1166_v61  ;;  %v1210_v39 = vadd.f32 0.00028619796, %v1209_v33  ;;  %v1221_v40 = vadd.f32 0.001143296, %v1220_v34 }
 0x334   : > { %v1180_v43 = vadd.f32 1e-05, %v1178_v37  ;;  %v1211_v44 = vmul.f32 %v1210_v39, %v1208_v30  ;;  %v1222_v45 = vmul.f32 %v1221_v40, %v1208_v30 }
 0x336   : > { %1779 = vrsqrt.f32 %v1180_v43  ;;  %v1223_v47 = vadd.f32 0.014752088, %v1222_v45  ;;  %v1212_v38 = vadd.f32 0.0036580483, %v1211_v44  ;;  %vm1197_vm1 = vweird.f32 %v1180_v43 }
 0x338   : > { %v1224_v48 = vmul.f32 %v1223_v47, %v1208_v30  ;;  %v1213_v51 = vmul.f32 %v1212_v38, %v1208_v30 }
 0x33a   : > { %v1225_v50 = vadd.f32 0.112945676, %v1224_v48  ;;  %v1214_v55 = vadd.f32 0.05243302, %v1213_v51 }
 0x33c   : > { %v1780_v52 = vpop.eup %1779  ;;  %v1226_v32 = vmul.f32 %v1225_v50, %v1208_v30  ;;  %v1215_v60 = vmul.f32 %v1214_v55, %v1208_v30 }
 0x33d   : > { %v1192_v53 = vmul.f32 %v1780_v52, %v1180_v43  ;;  %vm1198_vm0 = vweird.f32 %v1780_v52 }
 0x33e   : > { %v1227_v41 = vadd.f32 0.4994258, %v1226_v32  ;;  %vm1199_vm2 = vmor %vm1197_vm1, %vm1198_vm0  ;;  %v1216_v62 = vadd.f32 0.18741608, %v1215_v60 }
 0x33f   : > { %v1193_v54 = vmul.f32 %v1780_v52, %v1192_v53 }
 0x340   : > { %v1228_v56 = vmul.f32 %v1227_v41, %v1208_v30  ;;  %v1217_v3 = vmul.f32 %v1216_v62, %v1208_v30 }
 0x341   : > { %v1194_v57 = vmul.f32 0.5, %v1193_v54 }
 0x342   : > { %v1229_v58 = vadd.f32 1.0, %v1228_v56  ;;  %v1218_v10 = vadd.f32 1.1283791, %v1217_v3 }
 0x343   : > { %v1195_v59 = vsub.f32 1.5, %v1194_v57 }
 0x344   : > { %1781 = vrcp.f32 %v1229_v58  ;;  %v1241_v8 = vand.u32 2147483648, %v1229_v58  ;;  %v1239_v12 = vand.u32 2147483647, %v1229_v58  ;;  %vm1235_vm4 = vweird.f32 %v1229_v58 }
 0x345   : > { %v1196_v61 = vmul.f32 %v1780_v52, %v1195_v59  ;;  %v1219_v18 = vmul.f32 %v1218_v10, %v2207_v25 }
 0x346   : > { %vm1240_vm6 = vcmp.eq.f32.partialorder %v1239_v12, 8.507059e+37 }
 0x347   : > { %v1200_v63 = vsel %vm1199_vm2, %v1780_v52, %v1196_v61 }
 0x348   : > { %v2236_v0 = vmul.f32 %v1200_v63, %v2176_v4  ;;  %v1242_v4 = vor.u32 1.1754944e-38, %v1241_v8 }
 0x34a   : > { %v1782_v1 = vpop.eup %1781  ;;  %v1206_v2 = vmul.f32 0.70710677, %v2236_v0  ;;  %v1204_v55 = vmul.f32 0.5, %v2236_v0 }
 0x34b   : > { %v1231_v5 = vmul.f32 %v1782_v1, %v1229_v58  ;;  %vm1236_vm3 = vweird.f32 %v1782_v1  ;;  %v1773_v58 = vld [vmem:[%s2322_s11] ss:$0 sm:$0xff] }
 0x34c   : > { %v1247_v6 = vmul.f32 %v1206_v2, %v1206_v2  ;;  %vm1237_vm5 = vmor %vm1235_vm4, %vm1236_vm3 }
 0x34d   : > { %v1232_v7 = vsub.f32 1.0, %v1231_v5 }
 0x34e   : > { %v1248_v9 = vmin.f32 %v1247_v6, 16.0 }
 0x34f   : > { %v1233_v11 = vmul.f32 %v1782_v1, %v1232_v7 }
 0x350   : > { %v1249_v13 = vmul.f32 2.1237322e-06, %v1248_v9  ;;  %v1260_v14 = vmul.f32 3.8918573e-05, %v1248_v9 }
 0x351   : > { %v1234_v15 = vadd.f32 %v1782_v1, %v1233_v11 }
 0x352   : > { %v1250_v16 = vadd.f32 0.00028619796, %v1249_v13  ;;  %v1261_v17 = vadd.f32 0.001143296, %v1260_v14 }
 0x353   : > { %v1238_v19 = vsel %vm1237_vm5, %v1782_v1, %v1234_v15 }
 0x354   : > { %v1243_v20 = vsel %vm1240_vm6, %v1242_v4, %v1238_v19  ;;  %v1251_v21 = vmul.f32 %v1250_v16, %v1248_v9  ;;  %v1262_v22 = vmul.f32 %v1261_v17, %v1248_v9 }
 0x355   : > { %v1244_v24 = vmul.f32 %v1243_v20, %v1219_v18 }
 0x356   : > { %v1263_v26 = vadd.f32 0.014752088, %v1262_v22  ;;  %v1252_v29 = vadd.f32 0.0036580483, %v1251_v21 }
 0x357   : > { %v1735_v27 = vclamps-f32 %v1244_v24, 1.0 }
 0x358   : > { %v1264_v30 = vmul.f32 %v1263_v26, %v1248_v9  ;;  %v1253_v36 = vmul.f32 %v1252_v29, %v1248_v9 }
 0x359   : > { %v1287_v33 = vadd.f32 1.0, %v1735_v27 }
 0x35a   : > { %v1265_v34 = vadd.f32 0.112945676, %v1264_v30  ;;  %v1254_v25 = vadd.f32 0.05243302, %v1253_v36 }
 0x35b   : > { %v1289_v35 = vmul.f32 %v1287_v33, %v1203_v31  ;;  %v1480_v31 = vld [vmem:[%s2323_s12 + $0x38] sm:$0xff]  ;;  %v1479_v33 = vld [vmem:[%s2323_s12 + $0x30] sm:$0xff] }
 0x35c   : > { %v1266_v37 = vmul.f32 %v1265_v34, %v1248_v9  ;;  %v1255_v43 = vmul.f32 %v1254_v25, %v1248_v9  ;;  %1499 = vmatpush.msra.mxu1 %v1480_v31  ;;  %v1476_v25 = vld [vmem:[%s2323_s12 + $0x18] sm:$0xff] }
 0x35d   : > { %1327 = vmatmul.f32.vlgmr.msrb.gmra.mxu0 %v1289_v35  ;;  %v1478_v35 = vld [vmem:[%s2323_s12 + $0x28] sm:$0xff] }
 0x35e   : > { %v1267_v39 = vadd.f32 0.4994258, %v1266_v37  ;;  %v1256_v44 = vadd.f32 0.18741608, %v1255_v43  ;;  %1500 = vmatpush.msra.mxu1 %v1479_v33  ;;  %v1477_v37 = vld [vmem:[%s2323_s12 + $0x20] sm:$0xff] }
 0x360   : > { %v1268_v40 = vmul.f32 %v1267_v39, %v1248_v9  ;;  %v1257_v46 = vmul.f32 %v1256_v44, %v1248_v9  ;;  %1501 = vmatpush.msra.mxu1 %v1478_v35 }
 0x362   : > { %v1269_v42 = vadd.f32 1.0, %v1268_v40  ;;  %v1258_v48 = vadd.f32 1.1283791, %v1257_v46  ;;  %1502 = vmatpush.msra.mxu1 %v1477_v37  ;;  %v1474_v46 = vld [vmem:[%s2323_s12 + $0x8] sm:$0xff] }
 0x364   : > { %1783 = vrcp.f32 %v1269_v42  ;;  %v1281_v38 = vand.u32 2147483648, %v1269_v42  ;;  %v1279_v49 = vand.u32 2147483647, %v1269_v42  ;;  %vm1275_vm8 = vweird.f32 %v1269_v42  ;;  %1503 = vmatpush.msra.mxu1 %v1476_v25 }
 0x365   : > { %v1259_v52 = vmul.f32 %v1258_v48, %v1206_v2  ;;  %v1811_v2 = vmov 64.0   ;;  %v1473_v48 = vld [vmem:[%s2323_s12] sm:$0xff] }
 0x366   : > { %v1282_v51 = vor.u32 1.1754944e-38, %v1281_v38  ;;  %vm1280_vm10 = vcmp.eq.f32.partialorder %v1279_v49, 8.507059e+37  ;;  %1785 = vrcp.f32 %v1811_v2 }
 0x36a   : > { %v1784_v45 = vpop.eup %1783 }
 0x36b   : > { %v1271_v47 = vmul.f32 %v1784_v45, %v1269_v42  ;;  %vm1276_vm7 = vweird.f32 %v1784_v45  ;;  %v1475_v42 = vld [vmem:[%s2323_s12 + $0x10] sm:$0xff] }
 0x36c   : > { %vm1277_vm9 = vmor %vm1275_vm8, %vm1276_vm7  ;;  %v1786_v0 = vpop.eup %1785  ;;  %1504 = vmatpush.msra.mxu1 %v1475_v42 }
 0x36d   : > { %v1272_v28 = vsub.f32 1.0, %v1271_v47  ;;  %v1341_v3 = vmul.f32 64.0, %v1786_v0  ;;  %vm1345_vm12 = vweird.f32 %v1786_v0 }
 0x36e   : > { %1505 = vmatpush.msra.mxu1 %v1474_v46 }
 0x36f   : > { %v1273_v23 = vmul.f32 %v1784_v45, %v1272_v28  ;;  %v1342_v5 = vsub.f32 1.0, %v1341_v3 }
 0x370   : > { %1506 = vmatpush.msra.mxu1 %v1473_v48 }
 0x371   : > { %v1274_v50 = vadd.f32 %v1784_v45, %v1273_v23  ;;  %v1343_v6 = vmul.f32 %v1786_v0, %v1342_v5 }
 0x373   : > { %v1278_v32 = vsel %vm1277_vm9, %v1784_v45, %v1274_v50  ;;  %v1344_v7 = vadd.f32 %v1786_v0, %v1343_v6 }
 0x374   : > { %v1283_v53 = vsel %vm1280_vm10, %v1282_v51, %v1278_v32 }
 0x375   : > { %v1284_v41 = vmul.f32 %v1283_v53, %v1259_v52  ;;  %v1346_v8 = vsel %vm1345_vm12, %v1786_v0, %v1344_v7 }
 0x377   : > { %v1736_v54 = vclamps-f32 %v1284_v41, 1.0 }
 0x379   : > { %v1288_v56 = vadd.f32 1.0, %v1736_v54 }
 0x37b   : > { %v1290_v57 = vmul.f32 %v1288_v56, %v1204_v55 }
 0x37d   : > { %1330 = vmatmul.f32.gmra.mxu0 %v1290_v57 }
 0x3da   : > { %v1328_v59 = vpop.f32.mrf.mxu0 }
 0x3db   : > { %v1329_v60 = vadd.f32 %v1773_v58, %v1328_v59 }
 0x3dd   : > { %v1334_v61 = vsel %vm1069_vm11, %v1329_v60, 0.0 }
 0x3de   : > { %1335 = vadd.xlane.f32.xlu1 %v1334_v61 }
 0x3fa   : > { %v1331_v62 = vpop.f32.mrf.mxu0 }
 0x3fb   : > { %v1332_v63 = vadd.f32 %v1773_v58, %v1331_v62 }
 0x3fd   : > { %v1337_v1 = vsel %vm1069_vm11, %v1332_v63, 0.0 }
 0x3fe   : > { %1338 = vadd.xlane.f32.xlu2 %v1337_v1 }
 0x451   : > { %v1336_v9 = vpop.xlane.xlu1 %1335 }
 0x452   : > { %v1347_v10 = vmul.f32 %v1346_v8, %v1336_v9 }
 0x454   : > { %v1349_v11 = vsub.f32 %v1329_v60, %v1347_v10 }
 0x456   : > { %v1351_v12 = vmul.f32 %v1349_v11, %v1349_v11 }
 0x458   : > { %v1353_v13 = vsel %vm1069_vm11, %v1351_v12, 0.0 }
 0x459   : > { %1354 = vadd.xlane.f32.xlu0 %v1353_v13 }
 0x471   : > { %v1339_v14 = vpop.xlane.xlu2 %1338 }
 0x472   : > { %v1348_v15 = vmul.f32 %v1346_v8, %v1339_v14 }
 0x474   : > { %v2248_v4 = vsub.f32 %v1332_v63, %v1348_v15 }
 0x476   : > { %v1352_v16 = vmul.f32 %v2248_v4, %v2248_v4 }
 0x478   : > { %v1356_v17 = vsel %vm1069_vm11, %v1352_v16, 0.0 }
 0x479   : > { %1357 = vadd.xlane.f32.xlu1 %v1356_v17 }
 0x4cc   : > { %v1355_v18 = vpop.xlane.xlu0 %1354 }
 0x4cd   : > { %v1359_v19 = vmul.f32 %v1355_v18, %v1346_v8 }
 0x4cf   : > { %v1361_v20 = vadd.f32 1e-05, %v1359_v19 }
 0x4d1   : > { %1787 = vrsqrt.f32 %v1361_v20  ;;  %vm1369_vm14 = vweird.f32 %v1361_v20 }
 0x4d7   : > { %v1788_v21 = vpop.eup %1787 }
 0x4d8   : > { %v1364_v22 = vmul.f32 %v1788_v21, %v1361_v20  ;;  %vm1370_vm13 = vweird.f32 %v1788_v21 }
 0x4d9   : > { %vm1371_vm15 = vmor %vm1369_vm14, %vm1370_vm13 }
 0x4da   : > { %v1365_v24 = vmul.f32 %v1788_v21, %v1364_v22 }
 0x4dc   : > { %v1366_v26 = vmul.f32 0.5, %v1365_v24 }
 0x4de   : > { %v1367_v27 = vsub.f32 1.5, %v1366_v26 }
 0x4e0   : > { %v1368_v29 = vmul.f32 %v1788_v21, %v1367_v27 }
 0x4e2   : > { %v1372_v30 = vsel %vm1371_vm15, %v1788_v21, %v1368_v29 }
 0x4e3   : > { %v2259_v34 = vmul.f32 %v1372_v30, %v1349_v11 }
 0x4e5   : > { %v2265_v36 = vmul.f32 0.70710677, %v2259_v34 }
 0x4e7   : > { %v1389_v39 = vmul.f32 %v2265_v36, %v2265_v36 }
 0x4e9   : > { %v1390_v40 = vmin.f32 %v1389_v39, 16.0  ;;  %v1385_v39 = vmul.f32 0.5, %v2259_v34 }
 0x4eb   : > { %v1391_v43 = vmul.f32 2.1237322e-06, %v1390_v40  ;;  %v1402_v44 = vmul.f32 3.8918573e-05, %v1390_v40 }
 0x4ec   : > { %v1358_v45 = vpop.xlane.xlu1 %1357 }
 0x4ed   : > { %v1392_v47 = vadd.f32 0.00028619796, %v1391_v43  ;;  %v1360_v28 = vmul.f32 %v1358_v45, %v1346_v8  ;;  %v1403_v38 = vadd.f32 0.001143296, %v1402_v44 }
 0x4ef   : > { %v1393_v23 = vmul.f32 %v1392_v47, %v1390_v40  ;;  %v1362_v49 = vadd.f32 1e-05, %v1360_v28  ;;  %v1404_v50 = vmul.f32 %v1403_v38, %v1390_v40 }
 0x4f1   : > { %1789 = vrsqrt.f32 %v1362_v49  ;;  %v1405_v51 = vadd.f32 0.014752088, %v1404_v50  ;;  %v1394_v52 = vadd.f32 0.0036580483, %v1393_v23  ;;  %vm1379_vm1 = vweird.f32 %v1362_v49 }
 0x4f3   : > { %v1406_v32 = vmul.f32 %v1405_v51, %v1390_v40  ;;  %v1395_v41 = vmul.f32 %v1394_v52, %v1390_v40 }
 0x4f5   : > { %v1407_v53 = vadd.f32 0.112945676, %v1406_v32  ;;  %v1396_v58 = vadd.f32 0.05243302, %v1395_v41 }
 0x4f7   : > { %v1790_v54 = vpop.eup %1789  ;;  %v1408_v55 = vmul.f32 %v1407_v53, %v1390_v40  ;;  %v1397_v63 = vmul.f32 %v1396_v58, %v1390_v40 }
 0x4f8   : > { %v1374_v56 = vmul.f32 %v1790_v54, %v1362_v49  ;;  %vm1380_vm0 = vweird.f32 %v1790_v54 }
 0x4f9   : > { %v1409_v57 = vadd.f32 0.4994258, %v1408_v55  ;;  %vm1381_vm2 = vmor %vm1379_vm1, %vm1380_vm0  ;;  %v1398_v0 = vadd.f32 0.18741608, %v1397_v63 }
 0x4fa   : > { %v1375_v59 = vmul.f32 %v1790_v54, %v1374_v56 }
 0x4fb   : > { %v1410_v60 = vmul.f32 %v1409_v57, %v1390_v40  ;;  %v1399_v8 = vmul.f32 %v1398_v0, %v1390_v40 }
 0x4fc   : > { %v1376_v61 = vmul.f32 0.5, %v1375_v59 }
 0x4fd   : > { %v1411_v62 = vadd.f32 1.0, %v1410_v60  ;;  %v1400_v14 = vadd.f32 1.1283791, %v1399_v8 }
 0x4fe   : > { %v1377_v1 = vsub.f32 1.5, %v1376_v61 }
 0x4ff   : > { %1791 = vrcp.f32 %v1411_v62  ;;  %v1423_v12 = vand.u32 2147483648, %v1411_v62  ;;  %v1421_v16 = vand.u32 2147483647, %v1411_v62  ;;  %vm1417_vm4 = vweird.f32 %v1411_v62 }
 0x500   : > { %v1378_v2 = vmul.f32 %v1790_v54, %v1377_v1  ;;  %v1401_v22 = vmul.f32 %v1400_v14, %v2265_v36 }
 0x501   : > { %vm1422_vm6 = vcmp.eq.f32.partialorder %v1421_v16, 8.507059e+37 }
 0x502   : > { %v1382_v3 = vsel %vm1381_vm2, %v1790_v54, %v1378_v2 }
 0x503   : > { %v2285_v5 = vmul.f32 %v1382_v3, %v2248_v4  ;;  %v1424_v4 = vor.u32 1.1754944e-38, %v1423_v12 }
 0x505   : > { %v1792_v6 = vpop.eup %1791  ;;  %v1388_v7 = vmul.f32 0.70710677, %v2285_v5  ;;  %v1386_v59 = vmul.f32 0.5, %v2285_v5 }
 0x506   : > { %v1413_v9 = vmul.f32 %v1792_v6, %v1411_v62  ;;  %vm1418_vm3 = vweird.f32 %v1792_v6  ;;  %v1774_v62 = vld [vmem:[%s2324_s13] ss:$0 sm:$0xff] }
 0x507   : > { %v1429_v10 = vmul.f32 %v1388_v7, %v1388_v7  ;;  %vm1419_vm5 = vmor %vm1417_vm4, %vm1418_vm3 }
 0x508   : > { %v1414_v11 = vsub.f32 1.0, %v1413_v9 }
 0x509   : > { %v1430_v13 = vmin.f32 %v1429_v10, 16.0 }
 0x50a   : > { %v1415_v15 = vmul.f32 %v1792_v6, %v1414_v11 }
 0x50b   : > { %v1431_v17 = vmul.f32 2.1237322e-06, %v1430_v13  ;;  %v1442_v18 = vmul.f32 3.8918573e-05, %v1430_v13 }
 0x50c   : > { %v1416_v19 = vadd.f32 %v1792_v6, %v1415_v15 }
 0x50d   : > { %v1432_v20 = vadd.f32 0.00028619796, %v1431_v17  ;;  %v1443_v21 = vadd.f32 0.001143296, %v1442_v18 }
 0x50e   : > { %v1420_v24 = vsel %vm1419_vm5, %v1792_v6, %v1416_v19 }
 0x50f   : > { %v1425_v26 = vsel %vm1422_vm6, %v1424_v4, %v1420_v24  ;;  %v1433_v27 = vmul.f32 %v1432_v20, %v1430_v13  ;;  %v1444_v29 = vmul.f32 %v1443_v21, %v1430_v13 }
 0x510   : > { %v1426_v30 = vmul.f32 %v1425_v26, %v1401_v22 }
 0x511   : > { %v1445_v31 = vadd.f32 0.014752088, %v1444_v29  ;;  %v1434_v35 = vadd.f32 0.0036580483, %v1433_v27 }
 0x512   : > { %v1737_v33 = vclamps-f32 %v1426_v30, 1.0 }
 0x513   : > { %v1446_v37 = vmul.f32 %v1445_v31, %v1430_v13  ;;  %v1435_v43 = vmul.f32 %v1434_v35, %v1430_v13 }
 0x514   : > { %v1469_v25 = vadd.f32 1.0, %v1737_v33 }
 0x515   : > { %v1447_v40 = vadd.f32 0.112945676, %v1446_v37  ;;  %v1436_v45 = vadd.f32 0.05243302, %v1435_v43 }
 0x516   : > { %v1471_v42 = vmul.f32 %v1469_v25, %v1385_v39 }
 0x517   : > { %v1448_v44 = vmul.f32 %v1447_v40, %v1430_v13  ;;  %v1437_v28 = vmul.f32 %v1436_v45, %v1430_v13 }
 0x518   : > { %1739 = vmatmul.msk.f32.vlgmr.msra.gmra.mxu1 %vm1069_vm11, %v1471_v42 }
 0x519   : > { %v1449_v36 = vadd.f32 0.4994258, %v1448_v44  ;;  %v1438_v38 = vadd.f32 0.18741608, %v1437_v28 }
 0x51b   : > { %v1450_v46 = vmul.f32 %v1449_v36, %v1430_v13  ;;  %v1439_v23 = vmul.f32 %v1438_v38, %v1430_v13 }
 0x51d   : > { %v1451_v47 = vadd.f32 1.0, %v1450_v46  ;;  %v1440_v34 = vadd.f32 1.1283791, %v1439_v23 }
 0x51f   : > { %1793 = vrcp.f32 %v1451_v47  ;;  %v1463_v51 = vand.u32 2147483648, %v1451_v47  ;;  %v1461_v32 = vand.u32 2147483647, %v1451_v47  ;;  %vm1457_vm8 = vweird.f32 %v1451_v47 }
 0x520   : > { %v1441_v54 = vmul.f32 %v1440_v34, %v1388_v7 }
 0x521   : > { %v1464_v41 = vor.u32 1.1754944e-38, %v1463_v51  ;;  %vm1462_vm10 = vcmp.eq.f32.partialorder %v1461_v32, 8.507059e+37 }
 0x525   : > { %v1794_v48 = vpop.eup %1793 }
 0x526   : > { %v1453_v49 = vmul.f32 %v1794_v48, %v1451_v47  ;;  %vm1458_vm7 = vweird.f32 %v1794_v48 }
 0x527   : > { %vm1459_vm9 = vmor %vm1457_vm8, %vm1458_vm7 }
 0x528   : > { %v1454_v50 = vsub.f32 1.0, %v1453_v49 }
 0x52a   : > { %v1455_v52 = vmul.f32 %v1794_v48, %v1454_v50 }
 0x52c   : > { %v1456_v53 = vadd.f32 %v1794_v48, %v1455_v52 }
 0x52e   : > { %v1460_v55 = vsel %vm1459_vm9, %v1794_v48, %v1456_v53 }
 0x52f   : > { %v1465_v56 = vsel %vm1462_vm10, %v1464_v41, %v1460_v55 }
 0x530   : > { %v1466_v57 = vmul.f32 %v1465_v56, %v1441_v54 }
 0x532   : > { %v1738_v58 = vclamps-f32 %v1466_v57, 1.0 }
 0x534   : > { %v1470_v60 = vadd.f32 1.0, %v1738_v58 }
 0x536   : > { %v1472_v61 = vmul.f32 %v1470_v60, %v1386_v59 }
 0x538   : > { %1740 = vmatmul.msk.f32.gmra.mxu1 %vm1069_vm11, %v1472_v61 }
 0x595   : > { %v1508_v63 = vpop.f32.mrf.mxu1 }
 0x596   : > { %v1509_v1 = vadd.f32 %v1774_v62, %v1508_v63 }
 0x598   : > { %v1516_v2 = vmul.f32 0.70710677, %v1509_v1  ;;  %v1514_v32 = vmul.f32 0.5, %v1509_v1 }
 0x59a   : > { %v1518_v0 = vmul.f32 %v1516_v2, %v1516_v2 }
 0x59c   : > { %v1519_v3 = vmin.f32 %v1518_v0, 16.0 }
 0x59e   : > { %v1520_v6 = vmul.f32 2.1237322e-06, %v1519_v3  ;;  %v1531_v7 = vmul.f32 3.8918573e-05, %v1519_v3 }
 0x5a0   : > { %v1521_v8 = vadd.f32 0.00028619796, %v1520_v6  ;;  %v1532_v9 = vadd.f32 0.001143296, %v1531_v7 }
 0x5a2   : > { %v1522_v10 = vmul.f32 %v1521_v8, %v1519_v3  ;;  %v1533_v11 = vmul.f32 %v1532_v9, %v1519_v3 }
 0x5a4   : > { %v1534_v5 = vadd.f32 0.014752088, %v1533_v11  ;;  %v1523_v12 = vadd.f32 0.0036580483, %v1522_v10 }
 0x5a6   : > { %v1535_v13 = vmul.f32 %v1534_v5, %v1519_v3  ;;  %v1524_v15 = vmul.f32 %v1523_v12, %v1519_v3 }
 0x5a8   : > { %v1536_v14 = vadd.f32 0.112945676, %v1535_v13  ;;  %v1525_v18 = vadd.f32 0.05243302, %v1524_v15 }
 0x5aa   : > { %v1537_v16 = vmul.f32 %v1536_v14, %v1519_v3  ;;  %v1526_v20 = vmul.f32 %v1525_v18, %v1519_v3 }
 0x5ac   : > { %v1538_v17 = vadd.f32 0.4994258, %v1537_v16  ;;  %v1527_v21 = vadd.f32 0.18741608, %v1526_v20 }
 0x5ae   : > { %v1539_v19 = vmul.f32 %v1538_v17, %v1519_v3  ;;  %v1528_v29 = vmul.f32 %v1527_v21, %v1519_v3 }
 0x5b0   : > { %v1540_v4 = vadd.f32 1.0, %v1539_v19  ;;  %v1529_v39 = vadd.f32 1.1283791, %v1528_v29 }
 0x5b2   : > { %1795 = vrcp.f32 %v1540_v4  ;;  %v1552_v35 = vand.u32 2147483648, %v1540_v4  ;;  %v1550_v40 = vand.u32 2147483647, %v1540_v4  ;;  %vm1546_vm12 = vweird.f32 %v1540_v4 }
 0x5b3   : > { %v1530_v47 = vmul.f32 %v1529_v39, %v1516_v2 }
 0x5b4   : > { %v1553_v36 = vor.u32 1.1754944e-38, %v1552_v35  ;;  %vm1551_vm14 = vcmp.eq.f32.partialorder %v1550_v40, 8.507059e+37 }
 0x5b5   : > { %v1511_v22 = vpop.f32.mrf.mxu1 }
 0x5b6   : > { %v2296_v24 = vadd.f32 %v1774_v62, %v1511_v22 }
 0x5b8   : > { %v1796_v26 = vpop.eup %1795  ;;  %v1517_v27 = vmul.f32 0.70710677, %v2296_v24  ;;  %v1515_v15 = vmul.f32 0.5, %v2296_v24 }
 0x5b9   : > { %v1542_v30 = vmul.f32 %v1796_v26, %v1540_v4  ;;  %vm1547_vm11 = vweird.f32 %v1796_v26 }
 0x5ba   : > { %v1558_v31 = vmul.f32 %v1517_v27, %v1517_v27  ;;  %vm1548_vm13 = vmor %vm1546_vm12, %vm1547_vm11 }
 0x5bb   : > { %v1543_v33 = vsub.f32 1.0, %v1542_v30 }
 0x5bc   : > { %v1559_v37 = vmin.f32 %v1558_v31, 16.0 }
 0x5bd   : > { %v1544_v25 = vmul.f32 %v1796_v26, %v1543_v33 }
 0x5be   : > { %v1560_v42 = vmul.f32 2.1237322e-06, %v1559_v37  ;;  %v1571_v43 = vmul.f32 3.8918573e-05, %v1559_v37 }
 0x5bf   : > { %v1545_v44 = vadd.f32 %v1796_v26, %v1544_v25 }
 0x5c0   : > { %v1561_v45 = vadd.f32 0.00028619796, %v1560_v42  ;;  %v1572_v46 = vadd.f32 0.001143296, %v1571_v43 }
 0x5c1   : > { %v1549_v28 = vsel %vm1548_vm13, %v1796_v26, %v1545_v44 }
 0x5c2   : > { %v1554_v38 = vsel %vm1551_vm14, %v1553_v36, %v1549_v28  ;;  %v1562_v48 = vmul.f32 %v1561_v45, %v1559_v37  ;;  %v1573_v23 = vmul.f32 %v1572_v46, %v1559_v37 }
 0x5c3   : > { %v1555_v49 = vmul.f32 %v1554_v38, %v1530_v47 }
 0x5c4   : > { %v1574_v50 = vadd.f32 0.014752088, %v1573_v23  ;;  %v1563_v34 = vadd.f32 0.0036580483, %v1562_v48 }
 0x5c5   : > { %v1741_v51 = vclamps-f32 %v1555_v49, 1.0 }
 0x5c6   : > { %v1575_v52 = vmul.f32 %v1574_v50, %v1559_v37  ;;  %v1564_v55 = vmul.f32 %v1563_v34, %v1559_v37 }
 0x5c7   : > { %v1598_v53 = vadd.f32 1.0, %v1741_v51 }
 0x5c8   : > { %v1576_v41 = vadd.f32 0.112945676, %v1575_v52  ;;  %v1565_v58 = vadd.f32 0.05243302, %v1564_v55 }
 0x5c9   : > { %v1600_v54 = vmul.f32 %v1598_v53, %v1514_v32 }
 0x5ca   : > { %v1577_v56 = vmul.f32 %v1576_v41, %v1559_v37  ;;  %v1566_v61 = vmul.f32 %v1565_v58, %v1559_v37 }
 0x5cb   : > { %1602 = vst [vmem:[%s2303_s17] sm:$0xff] %v1600_v54 }
 0x5cc   : > { %v1578_v57 = vadd.f32 0.4994258, %v1577_v56  ;;  %v1567_v62 = vadd.f32 0.18741608, %v1566_v61 }
 0x5ce   : > { %v1579_v59 = vmul.f32 %v1578_v57, %v1559_v37  ;;  %v1568_v1 = vmul.f32 %v1567_v62, %v1559_v37 }
 0x5d0   : > { %v1580_v60 = vadd.f32 1.0, %v1579_v59  ;;  %v1569_v6 = vadd.f32 1.1283791, %v1568_v1 }
 0x5d2   : > { %1797 = vrcp.f32 %v1580_v60  ;;  %v1592_v3 = vand.u32 2147483648, %v1580_v60  ;;  %v1590_v8 = vand.u32 2147483647, %v1580_v60  ;;  %vm1586_vm0 = vweird.f32 %v1580_v60 }
 0x5d3   : > { %v1570_v11 = vmul.f32 %v1569_v6, %v1517_v27 }
 0x5d4   : > { %v1593_v10 = vor.u32 1.1754944e-38, %v1592_v3  ;;  %vm1591_vm2 = vcmp.eq.f32.partialorder %v1590_v8, 8.507059e+37 }
 0x5d8   : > { %v1798_v63 = vpop.eup %1797 }
 0x5d9   : > { %v1582_v2 = vmul.f32 %v1798_v63, %v1580_v60  ;;  %vm1587_vm15 = vweird.f32 %v1798_v63 }
 0x5da   : > { %vm1588_vm1 = vmor %vm1586_vm0, %vm1587_vm15 }
 0x5db   : > { %v1583_v0 = vsub.f32 1.0, %v1582_v2 }
 0x5dd   : > { %v1584_v7 = vmul.f32 %v1798_v63, %v1583_v0 }
 0x5df   : > { %v1585_v9 = vadd.f32 %v1798_v63, %v1584_v7 }
 0x5e1   : > { %v1589_v5 = vsel %vm1588_vm1, %v1798_v63, %v1585_v9 }
 0x5e2   : > { %v1594_v12 = vsel %vm1591_vm2, %v1593_v10, %v1589_v5 }
 0x5e3   : > { %v1595_v13 = vmul.f32 %v1594_v12, %v1570_v11 }
 0x5e5   : > { %v1742_v14 = vclamps-f32 %v1595_v13, 1.0 }
 0x5e7   : > { %v1599_v16 = vadd.f32 1.0, %v1742_v14 }
 0x5e9   : > { %v1601_v17 = vmul.f32 %v1599_v16, %v1515_v15 }
 0x5eb   : > { %1603 = vst [vmem:[%s2303_s17 + $0x8] sm:$0xff] %v1601_v17 }
 0x5ec PF: > { %s24_s29 = sadd.s32 1, %s1805_s29  }
 0x5ed   : > { %p21_p4 = scmp.ge.s32.totalorder %s24_s29, 5  }
 0x5ef   :  { %23 = sbr.rel (!%p21_p4) target bundleno = 1 (0x1), region = 115 }

</bundles_post_ra>
